<compile_context>
chip_gen: v7x
topology: tpu7x:2x2x1
jax: 0.10.0
libtpu: 0.0.40
codegen_flags: <defaults>
</compile_context>

<pallas_src>
import jax
import jax.numpy as jnp
from jax.experimental import pallas as pl
from jax.experimental.pallas import tpu as pltpu


IN_FEATURES = 512
HIDDEN = 512
OUT_FEATURES = 8 + 9 + 21   # 38
OUT_PADDED = 128            # lane-dense padded fc2 output width


def mlp_kernel(x_ref, w1_ref, b1_ref, w2_ref, b2_ref, o_ref):
    # fc1: (TB, 512) -> bf16 @ (512, 512)bf16, f32 accumulation, + bias (1, 512) f32
    x_bf16 = x_ref[...].astype(jnp.bfloat16)   # no-op cast if the producer already hands bf16
    h = jnp.dot(x_bf16, w1_ref[...], preferred_element_type=jnp.float32)
    h = h + b1_ref[...]
    # relu1
    h = jnp.maximum(h, 0.0)
    # dropout(0.5): identity in eval mode
    # fc2: (TB, 512)bf16 @ (512, 128)bf16, f32 accumulation, + bias (1, 128) f32
    out = jnp.dot(h.astype(jnp.bfloat16), w2_ref[...], preferred_element_type=jnp.float32)
    out = out + b2_ref[...]
    o_ref[...] = out.astype(o_ref.dtype)


def prepare_params(w1, b1, w2, b2):
    """One-time parameter preparation (hoisted out of the per-call hot path).

    w1/w2 come in PyTorch nn.Linear layout (out_features, in_features).
    Returns: w1_t (512,512) bf16, b1 (1,512) f32, w2_t (512,128) bf16 zero-padded,
             b2 (1,128) f32 zero-padded.
    """
    w1_t = jnp.asarray(w1).T.astype(jnp.bfloat16)                       # (512, 512)
    w2_t = jnp.asarray(w2).T                                            # (512, 38)
    w2_t = jnp.pad(w2_t, ((0, 0), (0, OUT_PADDED - OUT_FEATURES))).astype(jnp.bfloat16)
    b1_2d = jnp.asarray(b1).reshape(1, HIDDEN).astype(jnp.float32)
    b2_2d = jnp.pad(jnp.asarray(b2).reshape(1, OUT_FEATURES),
                    ((0, 0), (0, OUT_PADDED - OUT_FEATURES))).astype(jnp.float32)
    return w1_t, b1_2d, w2_t, b2_2d


def _round_up(n, m):
    return ((n + m - 1) // m) * m


def _choose_tiling(batch):
    """Pick (tile_b, n_tiles).

    * B <= 64: single tile (call is weight-DMA / launch bound anyway; see TODO above).
    * B  > 64: at least 2 tiles (so the "parallel" axis splits across v7x's two TCs),
               tile capped at 512 rows (amortizes the ~0.35 us per-grid-step overhead),
               always rounded up to the 8-row sublane tile.
    """
    if batch <= 64:
        return _round_up(max(batch, 8), 8), 1
    n_target = max(2, pl.cdiv(batch, 512))
    tile = min(512, _round_up(pl.cdiv(batch, n_target), 8))
    return tile, pl.cdiv(batch, tile)


def _build_in_specs(tile_b, single_buffer_weights):
    # Weights / biases have constant index_maps -> resident in VMEM across all grid steps.
    w_kw = dict(pipeline_mode=pl.Buffered(1)) if single_buffer_weights else {}
    return [
        pl.BlockSpec((tile_b, IN_FEATURES), lambda i: (i, 0)),
        pl.BlockSpec((IN_FEATURES, HIDDEN), lambda i: (0, 0), **w_kw),
        pl.BlockSpec((1, HIDDEN), lambda i: (0, 0), **w_kw),
        pl.BlockSpec((HIDDEN, OUT_PADDED), lambda i: (0, 0), **w_kw),
        pl.BlockSpec((1, OUT_PADDED), lambda i: (0, 0), **w_kw),
    ]


def mlp_forward_prepared(x, w1_t, b1_2d, w2_t, b2_2d, *, out_dtype=jnp.bfloat16):
    """x: (B, 512) float32 or bfloat16 (producer should hand bf16). Params from prepare_params()."""
    B = x.shape[0]
    assert x.shape == (B, IN_FEATURES), x.shape

    tile_b, n_tiles = _choose_tiling(B)
    B_pad = n_tiles * tile_b
    if B_pad != B:
        x = jnp.pad(x, ((0, B_pad - B), (0, 0)))

    bytes_accessed = (
        B_pad * IN_FEATURES * jnp.dtype(x.dtype).itemsize        # x stream
        + IN_FEATURES * HIDDEN * 2                                # w1 (bf16)
        + HIDDEN * OUT_PADDED * 2                                 # w2 (bf16, padded)
        + (HIDDEN + OUT_PADDED) * 4                               # biases (f32)
        + B_pad * OUT_PADDED * jnp.dtype(out_dtype).itemsize      # out stream
    )
    cost = pl.CostEstimate(
        flops=2 * B_pad * IN_FEATURES * HIDDEN + 2 * B_pad * HIDDEN * OUT_PADDED,
        transcendentals=0,
        bytes_accessed=bytes_accessed,
    )

    def _call(single_buffer_weights):
        return pl.pallas_call(
            mlp_kernel,
            out_shape=jax.ShapeDtypeStruct((B_pad, OUT_PADDED), out_dtype),
            grid_spec=pltpu.PrefetchScalarGridSpec(
                num_scalar_prefetch=0,
                grid=(n_tiles,),
                in_specs=_build_in_specs(tile_b, single_buffer_weights),
                out_specs=pl.BlockSpec((tile_b, OUT_PADDED), lambda i: (i, 0)),
            ),
            compiler_params=pltpu.CompilerParams(
                dimension_semantics=("parallel",),   # v7x: shard batch tiles across both TCs
            ),
            cost_estimate=cost,
        )(x, w1_t, b1_2d, w2_t, b2_2d)

    try:
        out_padded = _call(True)     # single-buffered weights/biases (constant index_map)
    except Exception:                # fallback if pl.Buffered(1) is rejected by this jax build
        out_padded = _call(False)

    return out_padded[:B, :OUT_FEATURES]


def mlp_forward(x, w1, b1, w2, b2, *, out_dtype=jnp.bfloat16):
    """Convenience wrapper taking PyTorch-layout params (prep NOT hoisted; use
    prepare_params + mlp_forward_prepared in a real hot loop)."""
    return mlp_forward_prepared(x, *prepare_params(w1, b1, w2, b2), out_dtype=out_dtype)


def init_params(key):
    """Deterministic init mimicking PyTorch nn.Linear default U(-1/sqrt(fan_in), 1/sqrt(fan_in))."""
    k1, k2, k3, k4 = jax.random.split(key, 4)
    bound1 = 1.0 / jnp.sqrt(float(IN_FEATURES))
    bound2 = 1.0 / jnp.sqrt(float(HIDDEN))
    w1 = jax.random.uniform(k1, (HIDDEN, IN_FEATURES), jnp.float32, -bound1, bound1)
    b1 = jax.random.uniform(k2, (HIDDEN,), jnp.float32, -bound1, bound1)
    w2 = jax.random.uniform(k3, (OUT_FEATURES, HIDDEN), jnp.float32, -bound2, bound2)
    b2 = jax.random.uniform(k4, (OUT_FEATURES,), jnp.float32, -bound2, bound2)
    return w1, b1, w2, b2


def _reference(x, w1, b1, w2, b2):
    """bf16-weight / f32-accumulation reference matching kernel arithmetic (eval-mode dropout)."""
    w1_bf = w1.T.astype(jnp.bfloat16)
    w2_bf = w2.T.astype(jnp.bfloat16)
    h = jnp.maximum(
        jnp.dot(x.astype(jnp.bfloat16), w1_bf, preferred_element_type=jnp.float32) + b1, 0.0)
    return jnp.dot(h.astype(jnp.bfloat16), w2_bf, preferred_element_type=jnp.float32) + b2


if __name__ == "__main__":
    key = jax.random.PRNGKey(0)
    k_x1, k_x2, k_p = jax.random.split(key, 3)

    w1, b1, w2, b2 = init_params(k_p)
    params = prepare_params(w1, b1, w2, b2)   # one-time param prep (transpose / pad / bf16)

    # --- small serving batch (single tile, grid=(1,)) -------------------------------------
    B_small = 8
    x_small = jax.random.normal(k_x1, (B_small, IN_FEATURES), jnp.float32)
    out_small = jax.block_until_ready(mlp_forward_prepared(x_small, *params))
    assert out_small.shape == (B_small, OUT_FEATURES), out_small.shape

    ref_small = _reference(x_small, w1, b1, w2, b2)
    assert jnp.allclose(out_small.astype(jnp.float32), ref_small, atol=3e-2, rtol=3e-2), \
        "mismatch vs bf16 reference (small batch)"
    ref_f32 = jnp.maximum(x_small @ w1.T + b1, 0.0) @ w2.T + b2
    assert jnp.allclose(out_small.astype(jnp.float32), ref_f32, atol=1e-1, rtol=1e-1), \
        "mismatch vs f32 reference (small batch)"

    # --- batched path: bf16 activations from the producer, >= 2 "parallel" tiles ----------
    B_big = 192   # -> tile_b = 96, grid=(2,): exercises the megacore-splittable multi-tile path
    x_big = jax.random.normal(k_x2, (B_big, IN_FEATURES), jnp.float32).astype(jnp.bfloat16)
    out_big = jax.block_until_ready(mlp_forward_prepared(x_big, *params))
    assert out_big.shape == (B_big, OUT_FEATURES), out_big.shape

    ref_big = _reference(x_big, w1, b1, w2, b2)
    assert jnp.allclose(out_big.astype(jnp.float32), ref_big, atol=3e-2, rtol=3e-2), \
        "mismatch vs bf16 reference (batched)"

    print("KERNEL_OK")
</pallas_src>

<mosaic_0001>
module attributes {stable_mosaic.version = 11 : i64} {
  func.func @mlp_kernel(%arg0: i32, %arg1: memref<8x512xf32, #tpu.memory_space<vmem>>, %arg2: memref<512x512xbf16, #tpu.memory_space<vmem>>, %arg3: memref<1x512xf32, #tpu.memory_space<vmem>>, %arg4: memref<512x128xbf16, #tpu.memory_space<vmem>>, %arg5: memref<1x128xf32, #tpu.memory_space<vmem>>, %arg6: memref<8x128xbf16, #tpu.memory_space<vmem>>) attributes {dimension_semantics = [#tpu.dimension_semantics<parallel>], iteration_bounds = array<i64: 1>, scalar_prefetch = 0 : i64, scratch_operands = 0 : i64, tpu.core_type = #tpu.core_type<tc>, window_params = [{transform_indices = @transform_0, window_bounds = array<i64: 8, 512>}, {pipeline_mode = #tpu.pipeline_mode<synchronous>, transform_indices = @transform_1, window_bounds = array<i64: 512, 512>}, {pipeline_mode = #tpu.pipeline_mode<synchronous>, transform_indices = @transform_2, window_bounds = array<i64: 1, 512>}, {pipeline_mode = #tpu.pipeline_mode<synchronous>, transform_indices = @transform_3, window_bounds = array<i64: 512, 128>}, {pipeline_mode = #tpu.pipeline_mode<synchronous>, transform_indices = @transform_4, window_bounds = array<i64: 1, 128>}, {transform_indices = @transform_5, window_bounds = array<i64: 8, 128>}]} {
    %c0 = arith.constant 0 : index
    %c0_0 = arith.constant 0 : index
    %0 = vector.load %arg1[%c0, %c0_0] : memref<8x512xf32, #tpu.memory_space<vmem>>, vector<8x512xf32>
    %1 = arith.truncf %0 : vector<8x512xf32> to vector<8x512xbf16>
    %c0_1 = arith.constant 0 : index
    %c0_2 = arith.constant 0 : index
    %2 = vector.load %arg2[%c0_1, %c0_2] : memref<512x512xbf16, #tpu.memory_space<vmem>>, vector<512x512xbf16>
    %cst = arith.constant dense<0.000000e+00> : vector<8x512xf32>
    %3 = tpu.matmul %1, %2, %cst {dimension_numbers = #tpu.dot_dimension_numbers<[1], [0], [0], [1], [0, 0, 1, 1], [], []>} : vector<8x512xbf16>, vector<512x512xbf16>, vector<8x512xf32> -> vector<8x512xf32>
    %c0_3 = arith.constant 0 : index
    %c0_4 = arith.constant 0 : index
    %4 = vector.load %arg3[%c0_3, %c0_4] : memref<1x512xf32, #tpu.memory_space<vmem>>, vector<1x512xf32>
    %5 = vector.broadcast %4 : vector<1x512xf32> to vector<8x512xf32>
    %6 = arith.addf %3, %5 : vector<8x512xf32>
    %cst_5 = arith.constant 0.000000e+00 : f32
    %7 = vector.broadcast %cst_5 : f32 to vector<8x512xf32>
    %8 = arith.maximumf %6, %7 : vector<8x512xf32>
    %9 = arith.truncf %8 : vector<8x512xf32> to vector<8x512xbf16>
    %c0_6 = arith.constant 0 : index
    %c0_7 = arith.constant 0 : index
    %10 = vector.load %arg4[%c0_6, %c0_7] : memref<512x128xbf16, #tpu.memory_space<vmem>>, vector<512x128xbf16>
    %cst_8 = arith.constant dense<0.000000e+00> : vector<8x128xf32>
    %11 = tpu.matmul %9, %10, %cst_8 {dimension_numbers = #tpu.dot_dimension_numbers<[1], [0], [0], [1], [0, 0, 1, 1], [], []>} : vector<8x512xbf16>, vector<512x128xbf16>, vector<8x128xf32> -> vector<8x128xf32>
    %c0_9 = arith.constant 0 : index
    %c0_10 = arith.constant 0 : index
    %12 = vector.load %arg5[%c0_9, %c0_10] : memref<1x128xf32, #tpu.memory_space<vmem>>, vector<1x128xf32>
    %13 = vector.broadcast %12 : vector<1x128xf32> to vector<8x128xf32>
    %14 = arith.addf %11, %13 : vector<8x128xf32>
    %15 = arith.truncf %14 : vector<8x128xf32> to vector<8x128xbf16>
    %c0_11 = arith.constant 0 : index
    %c0_12 = arith.constant 0 : index
    %16 = vector.load %arg6[%c0_11, %c0_12] : memref<8x128xbf16, #tpu.memory_space<vmem>>, vector<8x128xbf16>
    tpu.vector_store %arg6[%c0_11, %c0_12], %15 {strides = array<i32>} : memref<8x128xbf16, #tpu.memory_space<vmem>>, vector<8x128xbf16>,
    return
  }
  func.func @transform_0(%arg0: i32) -> (i32, i32) {
    %c0_i32 = arith.constant 0 : i32
    %c0_i32_0 = arith.constant 0 : i32
    return %arg0, %c0_i32 : i32, i32
  }
  func.func @transform_1(%arg0: i32) -> (i32, i32) {
    %c0_i32 = arith.constant 0 : i32
    %c0_i32_0 = arith.constant 0 : i32
    %c0_i32_1 = arith.constant 0 : i32
    return %c0_i32, %c0_i32_0 : i32, i32
  }
  func.func @transform_2(%arg0: i32) -> (i32, i32) {
    %c0_i32 = arith.constant 0 : i32
    %c0_i32_0 = arith.constant 0 : i32
    %c0_i32_1 = arith.constant 0 : i32
    return %c0_i32, %c0_i32_0 : i32, i32
  }
  func.func @transform_3(%arg0: i32) -> (i32, i32) {
    %c0_i32 = arith.constant 0 : i32
    %c0_i32_0 = arith.constant 0 : i32
    %c0_i32_1 = arith.constant 0 : i32
    return %c0_i32, %c0_i32_0 : i32, i32
  }
  func.func @transform_4(%arg0: i32) -> (i32, i32) {
    %c0_i32 = arith.constant 0 : i32
    %c0_i32_0 = arith.constant 0 : i32
    %c0_i32_1 = arith.constant 0 : i32
    return %c0_i32, %c0_i32_0 : i32, i32
  }
  func.func @transform_5(%arg0: i32) -> (i32, i32) {
    %c0_i32 = arith.constant 0 : i32
    %c0_i32_0 = arith.constant 0 : i32
    return %arg0, %c0_i32 : i32, i32
  }
}

module attributes {stable_mosaic.version = 11 : i64} {
  func.func @mlp_kernel(%arg0: i32, %arg1: memref<8x512xf32, #tpu.memory_space<vmem>>, %arg2: memref<512x512xbf16, #tpu.memory_space<vmem>>, %arg3: memref<1x512xf32, #tpu.memory_space<vmem>>, %arg4: memref<512x128xbf16, #tpu.memory_space<vmem>>, %arg5: memref<1x128xf32, #tpu.memory_space<vmem>>, %arg6: memref<8x128xbf16, #tpu.memory_space<vmem>>) attributes {dimension_semantics = [#tpu.dimension_semantics<parallel>], iteration_bounds = array<i64: 1>, scalar_prefetch = 0 : i64, scratch_operands = 0 : i64, tpu.core_type = #tpu.core_type<tc>, window_params = [{transform_indices = @transform_0, window_bounds = array<i64: 8, 512>}, {pipeline_mode = #tpu.pipeline_mode<synchronous>, transform_indices = @transform_1, window_bounds = array<i64: 512, 512>}, {pipeline_mode = #tpu.pipeline_mode<synchronous>, transform_indices = @transform_2, window_bounds = array<i64: 1, 512>}, {pipeline_mode = #tpu.pipeline_mode<synchronous>, transform_indices = @transform_3, window_bounds = array<i64: 512, 128>}, {pipeline_mode = #tpu.pipeline_mode<synchronous>, transform_indices = @transform_4, window_bounds = array<i64: 1, 128>}, {transform_indices = @transform_5, window_bounds = array<i64: 8, 128>}]} {
    %c0 = arith.constant 0 : index
    %c0_0 = arith.constant 0 : index
    %0 = vector.load %arg1[%c0, %c0_0] : memref<8x512xf32, #tpu.memory_space<vmem>>, vector<8x512xf32>
    %1 = arith.truncf %0 : vector<8x512xf32> to vector<8x512xbf16>
    %c0_1 = arith.constant 0 : index
    %c0_2 = arith.constant 0 : index
    %2 = vector.load %arg2[%c0_1, %c0_2] : memref<512x512xbf16, #tpu.memory_space<vmem>>, vector<512x512xbf16>
    %cst = arith.constant dense<0.000000e+00> : vector<8x512xf32>
    %3 = tpu.matmul %1, %2, %cst {dimension_numbers = #tpu.dot_dimension_numbers<[1], [0], [0], [1], [0, 0, 1, 1], [], []>} : vector<8x512xbf16>, vector<512x512xbf16>, vector<8x512xf32> -> vector<8x512xf32>
    %c0_3 = arith.constant 0 : index
    %c0_4 = arith.constant 0 : index
    %4 = vector.load %arg3[%c0_3, %c0_4] : memref<1x512xf32, #tpu.memory_space<vmem>>, vector<1x512xf32>
    %5 = vector.broadcast %4 : vector<1x512xf32> to vector<8x512xf32>
    %6 = arith.addf %3, %5 : vector<8x512xf32>
    %cst_5 = arith.constant 0.000000e+00 : f32
    %7 = vector.broadcast %cst_5 : f32 to vector<8x512xf32>
    %8 = arith.maximumf %6, %7 : vector<8x512xf32>
    %9 = arith.truncf %8 : vector<8x512xf32> to vector<8x512xbf16>
    %c0_6 = arith.constant 0 : index
    %c0_7 = arith.constant 0 : index
    %10 = vector.load %arg4[%c0_6, %c0_7] : memref<512x128xbf16, #tpu.memory_space<vmem>>, vector<512x128xbf16>
    %cst_8 = arith.constant dense<0.000000e+00> : vector<8x128xf32>
    %11 = tpu.matmul %9, %10, %cst_8 {dimension_numbers = #tpu.dot_dimension_numbers<[1], [0], [0], [1], [0, 0, 1, 1], [], []>} : vector<8x512xbf16>, vector<512x128xbf16>, vector<8x128xf32> -> vector<8x128xf32>
    %c0_9 = arith.constant 0 : index
    %c0_10 = arith.constant 0 : index
    %12 = vector.load %arg5[%c0_9, %c0_10] : memref<1x128xf32, #tpu.memory_space<vmem>>, vector<1x128xf32>
    %13 = vector.broadcast %12 : vector<1x128xf32> to vector<8x128xf32>
    %14 = arith.addf %11, %13 : vector<8x128xf32>
    %15 = arith.truncf %14 : vector<8x128xf32> to vector<8x128xbf16>
    %c0_11 = arith.constant 0 : index
    %c0_12 = arith.constant 0 : index
    %16 = vector.load %arg6[%c0_11, %c0_12] : memref<8x128xbf16, #tpu.memory_space<vmem>>, vector<8x128xbf16>
    tpu.vector_store %arg6[%c0_11, %c0_12], %15 {strides = array<i32>} : memref<8x128xbf16, #tpu.memory_space<vmem>>, vector<8x128xbf16>,
    return
  }
  func.func @transform_0(%arg0: i32) -> (i32, i32) {
    %c0_i32 = arith.constant 0 : i32
    %c0_i32_0 = arith.constant 0 : i32
    return %arg0, %c0_i32 : i32, i32
  }
  func.func @transform_1(%arg0: i32) -> (i32, i32) {
    %c0_i32 = arith.constant 0 : i32
    %c0_i32_0 = arith.constant 0 : i32
    %c0_i32_1 = arith.constant 0 : i32
    return %c0_i32, %c0_i32_0 : i32, i32
  }
  func.func @transform_2(%arg0: i32) -> (i32, i32) {
    %c0_i32 = arith.constant 0 : i32
    %c0_i32_0 = arith.constant 0 : i32
    %c0_i32_1 = arith.constant 0 : i32
    return %c0_i32, %c0_i32_0 : i32, i32
  }
  func.func @transform_3(%arg0: i32) -> (i32, i32) {
    %c0_i32 = arith.constant 0 : i32
    %c0_i32_0 = arith.constant 0 : i32
    %c0_i32_1 = arith.constant 0 : i32
    return %c0_i32, %c0_i32_0 : i32, i32
  }
  func.func @transform_4(%arg0: i32) -> (i32, i32) {
    %c0_i32 = arith.constant 0 : i32
    %c0_i32_0 = arith.constant 0 : i32
    %c0_i32_1 = arith.constant 0 : i32
    return %c0_i32, %c0_i32_0 : i32, i32
  }
  func.func @transform_5(%arg0: i32) -> (i32, i32) {
    %c0_i32 = arith.constant 0 : i32
    %c0_i32_0 = arith.constant 0 : i32
    return %arg0, %c0_i32 : i32, i32
  }
}

</mosaic_0001>

<bundles_post_ra>
// kernel: tpu_custom_call.1
= control target key start
LH: loop header
LB: loop body
LE: loop exit
PB: predicated region body
PF: predicated region fallthrough
CT: control target
= control target key end

     0   :  { %10 = vsyncpa [#allocation3], 0  ;;  %s2027_s0 = inlined_call_operand.hbm [shape: f32[8,512], index: 0, kind: input, shape index: {}]   ;;  %s2028_s1 = inlined_call_operand.hbm [shape: bf16[512,512], index: 1, kind: input, shape index: {}]   ;;  %s2029_s2 = inlined_call_operand.vmem [shape: f32[1,512], index: 2, kind: input, shape index: {}]   ;;  %s2030_s3 = inlined_call_operand.hbm [shape: bf16[512,128], index: 3, kind: input, shape index: {}]   ;;  %s2031_s4 = inlined_call_operand.vmem [shape: f32[1,128], index: 4, kind: input, shape index: {}]   ;;  %s2032_s5 = inlined_call_operand.hbm [shape: bf16[8,128], index: 5, kind: output, shape index: {}]  }
   0x1   :  { %11 = vsyncpa [#allocation6], 0 }
   0x2   :  { %12 = vsyncpa [#allocation4], 0  ;;  %s1935_s18 = smov [#allocation5]   ;;  %s1841_s22 = scalar_lea.hbm %s2028_s1, 16384 }
   0x3   :  { %s28_s19 = sshll.u32 %s1935_s18, 4  ;;  %p1842_p0 = scmp.ne.s32.totalorder %s2028_s1, %s1841_s22  ;;  %s29_s19 = int_to_ptr.vmem [resolvable:$true] %s28_s19 }
   0x4   :  { %p1845_p1 = scmp.lt.u32.totalorder %s1841_s22, %s2028_s1 }
   0x6   :  { %p1847_p2 = pnand %p1845_p1, %p1842_p0 }
   0x8   :  { %1850 = shalt.err (!%p1847_p2)
}
   0x9   :  { %s1851_s27 = scalar_lea.vmem %s29_s19, 16384  ;;  %p1856_p4 = scmp.lt.s32.totalorder %s29_s19, %s29_s19 }
   0xa   :  { %p1852_p3 = scmp.ne.s32.totalorder %s29_s19, %s1851_s27  ;;  %p1857_p5 = scmp.lt.s32.totalorder %s1851_s27, %s1851_s27 }
   0xc   :  { %p1858_p6 = por %p1857_p5, %p1856_p4 }
   0xe   :  { %p1859_p7 = pnand %p1858_p6, %p1852_p3 }
  0x10   :  { %1862 = shalt.err (!%p1859_p7)
}
  0x11   :  { %s1936_s28 = smov 256   ;;  %s1937_s29 = smov 16  }
  0x12   :  { %34 = dma.hbm_to_vmem [thread:$0]  %s2028_s1, 16384, %s29_s19, [#allocation6], %s1936_s28, %s1936_s28, %s1937_s29  }
  0x13   :  { %s1938_s7 = smov [#allocation2]   ;;  %s1939_s9 = smov [#allocation7]  }
  0x14   :  { %s19_s8 = sshll.u32 %s1938_s7, 4  ;;  %s42_s10 = sshll.u32 %s1939_s9, 4  ;;  %s20_s8 = int_to_ptr.vmem [resolvable:$true] %s19_s8  ;;  %s43_s10 = int_to_ptr.vmem [resolvable:$true] %s42_s10 }
  0x15   :  { %s1863_s13 = scalar_lea.hbm %s2027_s0, 512 }
  0x16   :  { %p1864_p8 = scmp.ne.s32.totalorder %s2027_s0, %s1863_s13  ;;  %p1867_p9 = scmp.lt.u32.totalorder %s1863_s13, %s2027_s0 }
  0x18   :  { %p1869_p10 = pnand %p1867_p9, %p1864_p8 }
  0x1a   :  { %1872 = shalt.err (!%p1869_p10)
}
  0x1b   :  { %s1873_s1 = scalar_lea.vmem %s20_s8, 512  ;;  %p1878_p12 = scmp.lt.s32.totalorder %s20_s8, %s20_s8 }
  0x1c   :  { %p1874_p11 = scmp.ne.s32.totalorder %s20_s8, %s1873_s1  ;;  %p1879_p13 = scmp.lt.s32.totalorder %s1873_s1, %s1873_s1 }
  0x1e   :  { %p1880_p0 = por %p1879_p13, %p1878_p12 }
  0x20   :  { %p1881_p1 = pnand %p1880_p0, %p1874_p11 }
  0x22   :  { %1884 = shalt.err (!%p1881_p1)
}
  0x23   :  { %22 = dma.hbm_to_vmem [thread:$0]  %s2027_s0, 512, %s20_s8, [#allocation3]  }
  0x24   :  { %s1885_s22 = scalar_lea.hbm %s2030_s3, 4096 }
  0x25   :  { %p1886_p2 = scmp.ne.s32.totalorder %s2030_s3, %s1885_s22  ;;  %p1889_p3 = scmp.lt.u32.totalorder %s1885_s22, %s2030_s3 }
  0x27   :  { %p1891_p4 = pnand %p1889_p3, %p1886_p2 }
  0x29   :  { %1894 = shalt.err (!%p1891_p4)
}
  0x2a   :  { %s1895_s27 = scalar_lea.vmem %s43_s10, 4096  ;;  %p1900_p6 = scmp.lt.s32.totalorder %s43_s10, %s43_s10 }
  0x2b   :  { %p1896_p5 = scmp.ne.s32.totalorder %s43_s10, %s1895_s27  ;;  %p1901_p7 = scmp.lt.s32.totalorder %s1895_s27, %s1895_s27 }
  0x2d   :  { %p1902_p8 = por %p1901_p7, %p1900_p6 }
  0x2f   :  { %p1903_p9 = pnand %p1902_p8, %p1896_p5 }
  0x31   :  { %1906 = shalt.err (!%p1903_p9)
}
  0x32   :  { %s1940_s0 = smov 64   ;;  %s1941_s28 = smov 4  }
  0x33   :  { %48 = dma.hbm_to_vmem [thread:$0]  %s2030_s3, 4096, %s43_s10, [#allocation6], %s1940_s0, %s1940_s0, %s1941_s28  }
  0x34   :  { %1929 = dma.done.wait [#allocation3], 512  }
  0x35   :  { %1930 = vsyncadd [#allocation3], 4294966784 }
  0x36   :  { %1931 = dma.done.wait [#allocation6], 20480  }
  0x37   :  { %1932 = vsyncadd [#allocation6], 4294946816  ;;  %v1617_v0 = vld [vmem:[#allocation5 + $0x4] ss:$16 sps:$4 sm:$0xff]   ;;  %v1619_v1 = vld [vmem:[#allocation5 + $0xc] ss:$16 sps:$4 sm:$0xff]  }
  0x38   :  { %859 = vmatprep.subr.bf16.mxu0 %v1617_v0  ;;  %v1621_v2 = vld [vmem:[#allocation5] ss:$16 sps:$4 sm:$0xff]   ;;  %v1622_v3 = vld [vmem:[#allocation5 + $0x8] ss:$16 sps:$4 sm:$0xff]   ;;  %941 = vmatprep.subr.bf16.mxu1 %v1619_v1  ;;  %v1623_v4 = vld [vmem:[#allocation5 + $0x24] ss:$16 sps:$4 sm:$0xff]  }
  0x39   :  { %860 = vmatpush1.bf16.msra.mxu0 %v1621_v2  ;;  %942 = vmatpush1.bf16.msra.mxu1 %v1622_v3  ;;  %v1625_v5 = vld [vmem:[#allocation5 + $0x2c] ss:$16 sps:$4 sm:$0xff]   ;;  %v1627_v6 = vld [vmem:[#allocation5 + $0x20] ss:$16 sps:$4 sm:$0xff]   ;;  %v1628_v7 = vld [vmem:[#allocation5 + $0x28] ss:$16 sps:$4 sm:$0xff]  }
  0x3a   :  { %861 = vmatprep.subr.bf16.mxu0 %v1623_v4  ;;  %943 = vmatprep.subr.bf16.mxu1 %v1625_v5  ;;  %v1629_v8 = vld [vmem:[#allocation5 + $0x44] ss:$16 sps:$4 sm:$0xff]   ;;  %v1631_v9 = vld [vmem:[#allocation5 + $0x4c] ss:$16 sps:$4 sm:$0xff]   ;;  %v1633_v10 = vld [vmem:[#allocation5 + $0x40] ss:$16 sps:$4 sm:$0xff]  }
  0x3b   :  { %v1634_v11 = vld [vmem:[#allocation5 + $0x48] ss:$16 sps:$4 sm:$0xff]   ;;  %v1635_v12 = vld [vmem:[#allocation5 + $0x64] ss:$16 sps:$4 sm:$0xff]   ;;  %v1637_v13 = vld [vmem:[#allocation5 + $0x6c] ss:$16 sps:$4 sm:$0xff]  }
  0x3c   :  { %v1639_v14 = vld [vmem:[#allocation5 + $0x60] ss:$16 sps:$4 sm:$0xff]   ;;  %v1640_v15 = vld [vmem:[#allocation5 + $0x68] ss:$16 sps:$4 sm:$0xff]   ;;  %v1641_v16 = vld [vmem:[#allocation5 + $0x84] ss:$16 sps:$4 sm:$0xff]  }
  0x3d   :  { %862 = vmatpush1.bf16.msra.mxu0 %v1627_v6  ;;  %944 = vmatpush1.bf16.msra.mxu1 %v1628_v7  ;;  %v1643_v17 = vld [vmem:[#allocation5 + $0x8c] ss:$16 sps:$4 sm:$0xff]   ;;  %v1645_v18 = vld [vmem:[#allocation5 + $0x80] ss:$16 sps:$4 sm:$0xff]   ;;  %v1646_v19 = vld [vmem:[#allocation5 + $0x88] ss:$16 sps:$4 sm:$0xff]  }
  0x3e   :  { %863 = vmatprep.subr.bf16.mxu0 %v1629_v8  ;;  %945 = vmatprep.subr.bf16.mxu1 %v1631_v9  ;;  %v1647_v20 = vld [vmem:[#allocation5 + $0xa4] ss:$16 sps:$4 sm:$0xff]   ;;  %v1649_v21 = vld [vmem:[#allocation5 + $0xac] ss:$16 sps:$4 sm:$0xff]   ;;  %v1651_v22 = vld [vmem:[#allocation5 + $0xa0] ss:$16 sps:$4 sm:$0xff]  }
  0x3f   :  { %v1652_v23 = vld [vmem:[#allocation5 + $0xa8] ss:$16 sps:$4 sm:$0xff]   ;;  %v1653_v24 = vld [vmem:[#allocation5 + $0xc4] ss:$16 sps:$4 sm:$0xff]   ;;  %v1655_v25 = vld [vmem:[#allocation5 + $0xcc] ss:$16 sps:$4 sm:$0xff]  }
  0x40   :  { %v1657_v26 = vld [vmem:[#allocation5 + $0xc0] ss:$16 sps:$4 sm:$0xff]   ;;  %v1658_v27 = vld [vmem:[#allocation5 + $0xc8] ss:$16 sps:$4 sm:$0xff]   ;;  %v1659_v28 = vld [vmem:[#allocation5 + $0xe4] ss:$16 sps:$4 sm:$0xff]  }
  0x41   :  { %864 = vmatpush1.bf16.msra.mxu0 %v1633_v10  ;;  %946 = vmatpush1.bf16.msra.mxu1 %v1634_v11  ;;  %v1661_v29 = vld [vmem:[#allocation5 + $0xec] ss:$16 sps:$4 sm:$0xff]   ;;  %v1663_v30 = vld [vmem:[#allocation5 + $0xe0] ss:$16 sps:$4 sm:$0xff]   ;;  %v1664_v31 = vld [vmem:[#allocation5 + $0xe8] ss:$16 sps:$4 sm:$0xff]  }
  0x42   :  { %865 = vmatprep.subr.bf16.mxu0 %v1635_v12  ;;  %947 = vmatprep.subr.bf16.mxu1 %v1637_v13  ;;  %v1665_v32 = vld [vmem:[#allocation5 + $0x104] ss:$16 sps:$4 sm:$0xff]   ;;  %v1667_v33 = vld [vmem:[#allocation5 + $0x10c] ss:$16 sps:$4 sm:$0xff]   ;;  %v1669_v34 = vld [vmem:[#allocation5 + $0x100] ss:$16 sps:$4 sm:$0xff]  }
  0x43   :  { %v1670_v35 = vld [vmem:[#allocation5 + $0x108] ss:$16 sps:$4 sm:$0xff]   ;;  %v1671_v36 = vld [vmem:[#allocation5 + $0x124] ss:$16 sps:$4 sm:$0xff]   ;;  %v1673_v37 = vld [vmem:[#allocation5 + $0x12c] ss:$16 sps:$4 sm:$0xff]  }
  0x44   :  { %v1675_v38 = vld [vmem:[#allocation5 + $0x120] ss:$16 sps:$4 sm:$0xff]   ;;  %v1676_v39 = vld [vmem:[#allocation5 + $0x128] ss:$16 sps:$4 sm:$0xff]   ;;  %v1677_v40 = vld [vmem:[#allocation5 + $0x144] ss:$16 sps:$4 sm:$0xff]  }
  0x45   :  { %866 = vmatpush1.bf16.msra.mxu0 %v1639_v14  ;;  %948 = vmatpush1.bf16.msra.mxu1 %v1640_v15  ;;  %v1679_v41 = vld [vmem:[#allocation5 + $0x14c] ss:$16 sps:$4 sm:$0xff]   ;;  %v1681_v42 = vld [vmem:[#allocation5 + $0x140] ss:$16 sps:$4 sm:$0xff]   ;;  %v1682_v43 = vld [vmem:[#allocation5 + $0x148] ss:$16 sps:$4 sm:$0xff]  }
  0x46   :  { %867 = vmatprep.subr.bf16.mxu0 %v1641_v16  ;;  %949 = vmatprep.subr.bf16.mxu1 %v1643_v17  ;;  %v1683_v44 = vld [vmem:[#allocation5 + $0x164] ss:$16 sps:$4 sm:$0xff]   ;;  %v1685_v45 = vld [vmem:[#allocation5 + $0x16c] ss:$16 sps:$4 sm:$0xff]   ;;  %v1687_v47 = vld [vmem:[#allocation5 + $0x160] ss:$16 sps:$4 sm:$0xff]  }
  0x47   :  { %v62_v46 = vld [vmem:[#allocation2 + $0x8] sm:$0xff]  ;;  %v1689_v50 = vld [vmem:[#allocation5 + $0x184] ss:$16 sps:$4 sm:$0xff]   ;;  %v1693_v52 = vld [vmem:[#allocation5 + $0x180] ss:$16 sps:$4 sm:$0xff]   ;;  %s1942_s8 = smov [#allocation8]  }
  0x48   :  { %v66_v48 = vpack.c.bf16 %v62_v46, %v62_v46  ;;  %v1688_v49 = vld [vmem:[#allocation5 + $0x168] ss:$16 sps:$4 sm:$0xff]   ;;  %v1691_v51 = vld [vmem:[#allocation5 + $0x18c] ss:$16 sps:$4 sm:$0xff]   ;;  %v1695_v54 = vld [vmem:[#allocation5 + $0x1a4] ss:$16 sps:$4 sm:$0xff]  }
  0x49   :  { %868 = vmatpush1.bf16.msra.mxu0 %v1645_v18  ;;  %950 = vmatpush1.bf16.msra.mxu1 %v1646_v19  ;;  %v1694_v53 = vld [vmem:[#allocation5 + $0x188] ss:$16 sps:$4 sm:$0xff]   ;;  %v1697_v55 = vld [vmem:[#allocation5 + $0x1ac] ss:$16 sps:$4 sm:$0xff]   ;;  %v1699_v56 = vld [vmem:[#allocation5 + $0x1a0] ss:$16 sps:$4 sm:$0xff]  }
  0x4a   :  { %869 = vmatprep.subr.bf16.mxu0 %v1647_v20  ;;  %951 = vmatprep.subr.bf16.mxu1 %v1649_v21  ;;  %v1700_v57 = vld [vmem:[#allocation5 + $0x1a8] ss:$16 sps:$4 sm:$0xff]   ;;  %v1701_v58 = vld [vmem:[#allocation5 + $0x1c4] ss:$16 sps:$4 sm:$0xff]   ;;  %v1703_v59 = vld [vmem:[#allocation5 + $0x1cc] ss:$16 sps:$4 sm:$0xff]  }
  0x4b   :  { %891 = vmatprep.mubr.bf16.mxu0 %v66_v48  ;;  %973 = vmatprep.mubr.bf16.mxu1 %v66_v48  ;;  %v1705_v60 = vld [vmem:[#allocation5 + $0x1c0] ss:$16 sps:$4 sm:$0xff]   ;;  %v1706_v61 = vld [vmem:[#allocation5 + $0x1c8] ss:$16 sps:$4 sm:$0xff]   ;;  %v1707_v62 = vld [vmem:[#allocation5 + $0x1e4] ss:$16 sps:$4 sm:$0xff]  }
  0x4c   :  { %v1709_v63 = vld [vmem:[#allocation5 + $0x1ec] ss:$16 sps:$4 sm:$0xff]   ;;  %v1711_v0 = vld [vmem:[#allocation5 + $0x1e0] ss:$16 sps:$4 sm:$0xff]   ;;  %v1712_v1 = vld [vmem:[#allocation5 + $0x1e8] ss:$16 sps:$4 sm:$0xff]  }
  0x4d   :  { %870 = vmatpush1.bf16.msra.mxu0 %v1651_v22  ;;  %952 = vmatpush1.bf16.msra.mxu1 %v1652_v23  ;;  %v61_v2 = vld [vmem:[#allocation2] sm:$0xff]  ;;  %v1718_v4 = vld [vmem:[#allocation5 + $0x20c] ss:$16 sps:$4 sm:$0xff]   ;;  %v1716_v7 = vld [vmem:[#allocation5 + $0x208] ss:$16 sps:$4 sm:$0xff]   ;;  %s1382_s9 = sshll.u32 %s1942_s8, 4  ;;  %s1383_s9 = int_to_ptr.vmem [resolvable:$true] %s1382_s9 }
  0x4e   :  { %871 = vmatprep.subr.bf16.mxu0 %v1653_v24  ;;  %953 = vmatprep.subr.bf16.mxu1 %v1655_v25  ;;  %v1715_v3 = vld [vmem:[#allocation5 + $0x204] ss:$16 sps:$4 sm:$0xff]   ;;  %v65_v5 = vpack.c.bf16 %v61_v2, %v61_v2  ;;  %v1713_v6 = vld [vmem:[#allocation5 + $0x200] ss:$16 sps:$4 sm:$0xff]   ;;  %v1724_v9 = vld [vmem:[#allocation5 + $0x22c] ss:$16 sps:$4 sm:$0xff]   ;;  %p1912_p11 = scmp.lt.s32.totalorder %s1383_s9, %s1383_s9 }
  0x4f   :  { %v1721_v8 = vld [vmem:[#allocation5 + $0x224] ss:$16 sps:$4 sm:$0xff]   ;;  %v1719_v10 = vld [vmem:[#allocation5 + $0x220] ss:$16 sps:$4 sm:$0xff]   ;;  %v1722_v11 = vld [vmem:[#allocation5 + $0x228] ss:$16 sps:$4 sm:$0xff]  }
  0x50   :  { %v1727_v12 = vld [vmem:[#allocation5 + $0x244] ss:$16 sps:$4 sm:$0xff]   ;;  %v1730_v13 = vld [vmem:[#allocation5 + $0x24c] ss:$16 sps:$4 sm:$0xff]   ;;  %v1725_v14 = vld [vmem:[#allocation5 + $0x240] ss:$16 sps:$4 sm:$0xff]  }
  0x51   :  { %872 = vmatpush1.bf16.msra.mxu0 %v1657_v26  ;;  %954 = vmatpush1.bf16.msra.mxu1 %v1658_v27  ;;  %v1728_v15 = vld [vmem:[#allocation5 + $0x248] ss:$16 sps:$4 sm:$0xff]   ;;  %v1733_v16 = vld [vmem:[#allocation5 + $0x264] ss:$16 sps:$4 sm:$0xff]   ;;  %v1736_v17 = vld [vmem:[#allocation5 + $0x26c] ss:$16 sps:$4 sm:$0xff]  }
  0x52   :  { %873 = vmatprep.subr.bf16.mxu0 %v1659_v28  ;;  %955 = vmatprep.subr.bf16.mxu1 %v1661_v29  ;;  %v1731_v18 = vld [vmem:[#allocation5 + $0x260] ss:$16 sps:$4 sm:$0xff]   ;;  %v1734_v19 = vld [vmem:[#allocation5 + $0x268] ss:$16 sps:$4 sm:$0xff]   ;;  %v1739_v20 = vld [vmem:[#allocation5 + $0x284] ss:$16 sps:$4 sm:$0xff]  }
  0x53   :  { %v1742_v21 = vld [vmem:[#allocation5 + $0x28c] ss:$16 sps:$4 sm:$0xff]   ;;  %v1737_v22 = vld [vmem:[#allocation5 + $0x280] ss:$16 sps:$4 sm:$0xff]   ;;  %v1740_v23 = vld [vmem:[#allocation5 + $0x288] ss:$16 sps:$4 sm:$0xff]  }
  0x54   :  { %v1745_v24 = vld [vmem:[#allocation5 + $0x2a4] ss:$16 sps:$4 sm:$0xff]   ;;  %v1748_v25 = vld [vmem:[#allocation5 + $0x2ac] ss:$16 sps:$4 sm:$0xff]   ;;  %v1743_v26 = vld [vmem:[#allocation5 + $0x2a0] ss:$16 sps:$4 sm:$0xff]  }
  0x55   :  { %874 = vmatpush1.bf16.msra.mxu0 %v1663_v30  ;;  %956 = vmatpush1.bf16.msra.mxu1 %v1664_v31  ;;  %v1746_v27 = vld [vmem:[#allocation5 + $0x2a8] ss:$16 sps:$4 sm:$0xff]   ;;  %v1751_v28 = vld [vmem:[#allocation5 + $0x2c4] ss:$16 sps:$4 sm:$0xff]   ;;  %v1754_v29 = vld [vmem:[#allocation5 + $0x2cc] ss:$16 sps:$4 sm:$0xff]  }
  0x56   :  { %875 = vmatprep.subr.bf16.mxu0 %v1665_v32  ;;  %957 = vmatprep.subr.bf16.mxu1 %v1667_v33  ;;  %v1749_v30 = vld [vmem:[#allocation5 + $0x2c0] ss:$16 sps:$4 sm:$0xff]   ;;  %v64_v31 = vld [vmem:[#allocation2 + $0x18] sm:$0xff]  ;;  %v1775_v46 = vld [vmem:[#allocation5 + $0x344] ss:$16 sps:$4 sm:$0xff]   ;;  %s1907_s10 = scalar_lea.vmem %s1383_s9, 64 }
  0x57   :  { %v1752_v32 = vld [vmem:[#allocation5 + $0x2c8] ss:$16 sps:$4 sm:$0xff]   ;;  %v68_v33 = vpack.c.bf16 %v64_v31, %v64_v31  ;;  %v1773_v48 = vld [vmem:[#allocation5 + $0x340] ss:$16 sps:$4 sm:$0xff]   ;;  %v1805_v2 = vld [vmem:[#allocation5 + $0x3e4] ss:$16 sps:$4 sm:$0xff]   ;;  %p1908_p10 = scmp.ne.s32.totalorder %s1383_s9, %s1907_s10  ;;  %p1913_p12 = scmp.lt.s32.totalorder %s1907_s10, %s1907_s10 }
  0x58   :  { %v1832_v31 = vld [vmem:[#allocation7 + $0xa8] sm:$0xff]  }
  0x59   :  { %876 = vmatpush1.bf16.msra.mxu0 %v1669_v34  ;;  %958 = vmatpush1.bf16.msra.mxu1 %v1670_v35  ;;  %v1757_v34 = vld [vmem:[#allocation5 + $0x2e4] ss:$16 sps:$4 sm:$0xff]   ;;  %v1760_v35 = vld [vmem:[#allocation5 + $0x2ec] ss:$16 sps:$4 sm:$0xff]   ;;  %p1914_p13 = por %p1913_p12, %p1912_p11 }
  0x5a   :  { %877 = vmatprep.subr.bf16.mxu0 %v1671_v36  ;;  %959 = vmatprep.subr.bf16.mxu1 %v1673_v37  ;;  %v1755_v36 = vld [vmem:[#allocation5 + $0x2e0] ss:$16 sps:$4 sm:$0xff]   ;;  %v1758_v37 = vld [vmem:[#allocation5 + $0x2e8] ss:$16 sps:$4 sm:$0xff]  }
  0x5b   :  { %p1915_p0 = pnand %p1914_p13, %p1908_p10 }
  0x5d   :  { %878 = vmatpush1.bf16.msra.mxu0 %v1675_v38  ;;  %960 = vmatpush1.bf16.msra.mxu1 %v1676_v39  ;;  %v1763_v38 = vld [vmem:[#allocation5 + $0x304] ss:$16 sps:$4 sm:$0xff]   ;;  %v1766_v39 = vld [vmem:[#allocation5 + $0x30c] ss:$16 sps:$4 sm:$0xff]  }
  0x5e   :  { %879 = vmatprep.subr.bf16.mxu0 %v1677_v40  ;;  %961 = vmatprep.subr.bf16.mxu1 %v1679_v41  ;;  %v1761_v40 = vld [vmem:[#allocation5 + $0x300] ss:$16 sps:$4 sm:$0xff]   ;;  %v1764_v41 = vld [vmem:[#allocation5 + $0x308] ss:$16 sps:$4 sm:$0xff]  }
  0x61   :  { %880 = vmatpush1.bf16.msra.mxu0 %v1681_v42  ;;  %962 = vmatpush1.bf16.msra.mxu1 %v1682_v43  ;;  %v1769_v42 = vld [vmem:[#allocation5 + $0x324] ss:$16 sps:$4 sm:$0xff]   ;;  %v1772_v43 = vld [vmem:[#allocation5 + $0x32c] ss:$16 sps:$4 sm:$0xff]  }
  0x62   :  { %881 = vmatprep.subr.bf16.mxu0 %v1683_v44  ;;  %963 = vmatprep.subr.bf16.mxu1 %v1685_v45  ;;  %v1767_v44 = vld [vmem:[#allocation5 + $0x320] ss:$16 sps:$4 sm:$0xff]   ;;  %v1770_v45 = vld [vmem:[#allocation5 + $0x328] ss:$16 sps:$4 sm:$0xff]  }
  0x65   :  { %882 = vmatpush1.bf16.msra.mxu0 %v1687_v47  ;;  %964 = vmatpush1.bf16.msra.mxu1 %v1688_v49  ;;  %v1778_v47 = vld [vmem:[#allocation5 + $0x34c] ss:$16 sps:$4 sm:$0xff]   ;;  %v1776_v49 = vld [vmem:[#allocation5 + $0x348] ss:$16 sps:$4 sm:$0xff]  }
  0x66   :  { %883 = vmatprep.subr.bf16.mxu0 %v1689_v50  ;;  %965 = vmatprep.subr.bf16.mxu1 %v1691_v51  ;;  %v1781_v50 = vld [vmem:[#allocation5 + $0x364] ss:$16 sps:$4 sm:$0xff]   ;;  %v1784_v51 = vld [vmem:[#allocation5 + $0x36c] ss:$16 sps:$4 sm:$0xff]  }
  0x69   :  { %884 = vmatpush1.bf16.msra.mxu0 %v1693_v52  ;;  %966 = vmatpush1.bf16.msra.mxu1 %v1694_v53  ;;  %v1779_v52 = vld [vmem:[#allocation5 + $0x360] ss:$16 sps:$4 sm:$0xff]   ;;  %v1782_v53 = vld [vmem:[#allocation5 + $0x368] ss:$16 sps:$4 sm:$0xff]  }
  0x6a   :  { %885 = vmatprep.subr.bf16.mxu0 %v1695_v54  ;;  %967 = vmatprep.subr.bf16.mxu1 %v1697_v55  ;;  %v1787_v54 = vld [vmem:[#allocation5 + $0x384] ss:$16 sps:$4 sm:$0xff]   ;;  %v1790_v55 = vld [vmem:[#allocation5 + $0x38c] ss:$16 sps:$4 sm:$0xff]  }
  0x6d   :  { %886 = vmatpush1.bf16.msra.mxu0 %v1699_v56  ;;  %968 = vmatpush1.bf16.msra.mxu1 %v1700_v57  ;;  %v1785_v56 = vld [vmem:[#allocation5 + $0x380] ss:$16 sps:$4 sm:$0xff]   ;;  %v1788_v57 = vld [vmem:[#allocation5 + $0x388] ss:$16 sps:$4 sm:$0xff]  }
  0x6e   :  { %887 = vmatprep.subr.bf16.mxu0 %v1701_v58  ;;  %969 = vmatprep.subr.bf16.mxu1 %v1703_v59  ;;  %v1793_v58 = vld [vmem:[#allocation5 + $0x3a4] ss:$16 sps:$4 sm:$0xff]   ;;  %v1796_v59 = vld [vmem:[#allocation5 + $0x3ac] ss:$16 sps:$4 sm:$0xff]  }
  0x71   :  { %888 = vmatpush1.bf16.msra.mxu0 %v1705_v60  ;;  %970 = vmatpush1.bf16.msra.mxu1 %v1706_v61  ;;  %v1791_v60 = vld [vmem:[#allocation5 + $0x3a0] ss:$16 sps:$4 sm:$0xff]   ;;  %v1794_v61 = vld [vmem:[#allocation5 + $0x3a8] ss:$16 sps:$4 sm:$0xff]  }
  0x72   :  { %889 = vmatprep.subr.bf16.mxu0 %v1707_v62  ;;  %971 = vmatprep.subr.bf16.mxu1 %v1709_v63  ;;  %v1799_v62 = vld [vmem:[#allocation5 + $0x3c4] ss:$16 sps:$4 sm:$0xff]   ;;  %v1802_v63 = vld [vmem:[#allocation5 + $0x3cc] ss:$16 sps:$4 sm:$0xff]  }
  0x75   :  { %890 = vmatpush1.bf16.msra.mxu0 %v1711_v0  ;;  %972 = vmatpush1.bf16.msra.mxu1 %v1712_v1  ;;  %v1797_v0 = vld [vmem:[#allocation5 + $0x3c0] ss:$16 sps:$4 sm:$0xff]   ;;  %v1800_v1 = vld [vmem:[#allocation5 + $0x3c8] ss:$16 sps:$4 sm:$0xff]  }
  0x76   :  { %900 = vmatprep.subr.bf16.mxu0 %v1715_v3  ;;  %982 = vmatprep.subr.bf16.mxu1 %v1718_v4  ;;  %v1808_v3 = vld [vmem:[#allocation5 + $0x3ec] ss:$16 sps:$4 sm:$0xff]   ;;  %v1803_v4 = vld [vmem:[#allocation5 + $0x3e0] ss:$16 sps:$4 sm:$0xff]  }
  0x78   :  { %892 = vmatmul.mubr.bf16.vlgmr.msra.gmra.mrb[0].mxu0 %v65_v5  ;;  %974 = vmatmul.mubr.bf16.vlgmr.msra.gmra.mrb[0].mxu1 %v65_v5  ;;  %v1806_v5 = vld [vmem:[#allocation5 + $0x3e8] ss:$16 sps:$4 sm:$0xff]  }
  0x79   :  { %901 = vmatpush1.bf16.msra.mxu0 %v1713_v6  ;;  %983 = vmatpush1.bf16.msra.mxu1 %v1716_v7  ;;  %v63_v6 = vld [vmem:[#allocation2 + $0x10] sm:$0xff]  ;;  %v1809_v7 = vld [vmem:[#allocation7 + $0x40] sm:$0xff]  }
  0x7a   :  { %902 = vmatprep.subr.bf16.mxu0 %v1721_v8  ;;  %984 = vmatprep.subr.bf16.mxu1 %v1724_v9  ;;  %v1810_v8 = vld [vmem:[#allocation7 + $0xc0] sm:$0xff]   ;;  %v67_v9 = vpack.c.bf16 %v63_v6, %v63_v6 }
  0x7b   :  { %932 = vmatprep.mubr.bf16.mxu0 %v68_v33  ;;  %1014 = vmatprep.mubr.bf16.mxu1 %v68_v33  ;;  %v1834_v33 = vld [vmem:[#allocation7 + $0xf0] sm:$0xff]  }
  0x7d   :  { %903 = vmatpush1.bf16.msra.mxu0 %v1719_v10  ;;  %985 = vmatpush1.bf16.msra.mxu1 %v1722_v11  ;;  %v1811_v10 = vld [vmem:[#allocation7] sm:$0xff]  }
  0x7e   :  { %904 = vmatprep.subr.bf16.mxu0 %v1727_v12  ;;  %986 = vmatprep.subr.bf16.mxu1 %v1730_v13  ;;  %v1812_v11 = vld [vmem:[#allocation7 + $0x80] sm:$0xff]   ;;  %v1813_v12 = vld [vmem:[#allocation7 + $0x48] sm:$0xff]  }
  0x7f   :  { %v1814_v13 = vld [vmem:[#allocation7 + $0xc8] sm:$0xff]  }
  0x81   :  { %905 = vmatpush1.bf16.msra.mxu0 %v1725_v14  ;;  %987 = vmatpush1.bf16.msra.mxu1 %v1728_v15  ;;  %v1815_v14 = vld [vmem:[#allocation7 + $0x8] sm:$0xff]  }
  0x82   :  { %906 = vmatprep.subr.bf16.mxu0 %v1733_v16  ;;  %988 = vmatprep.subr.bf16.mxu1 %v1736_v17  ;;  %v1816_v15 = vld [vmem:[#allocation7 + $0x88] sm:$0xff]   ;;  %v1817_v16 = vld [vmem:[#allocation7 + $0x50] sm:$0xff]  }
  0x83   :  { %v1818_v17 = vld [vmem:[#allocation7 + $0xd0] sm:$0xff]  }
  0x85   :  { %907 = vmatpush1.bf16.msra.mxu0 %v1731_v18  ;;  %989 = vmatpush1.bf16.msra.mxu1 %v1734_v19  ;;  %v1819_v18 = vld [vmem:[#allocation7 + $0x10] sm:$0xff]  }
  0x86   :  { %908 = vmatprep.subr.bf16.mxu0 %v1739_v20  ;;  %990 = vmatprep.subr.bf16.mxu1 %v1742_v21  ;;  %v1820_v19 = vld [vmem:[#allocation7 + $0x90] sm:$0xff]   ;;  %v1821_v20 = vld [vmem:[#allocation7 + $0x58] sm:$0xff]  }
  0x87   :  { %v1822_v21 = vld [vmem:[#allocation7 + $0xd8] sm:$0xff]  }
  0x89   :  { %909 = vmatpush1.bf16.msra.mxu0 %v1737_v22  ;;  %991 = vmatpush1.bf16.msra.mxu1 %v1740_v23  ;;  %v1823_v22 = vld [vmem:[#allocation7 + $0x18] sm:$0xff]  }
  0x8a   :  { %910 = vmatprep.subr.bf16.mxu0 %v1745_v24  ;;  %992 = vmatprep.subr.bf16.mxu1 %v1748_v25  ;;  %v1824_v23 = vld [vmem:[#allocation7 + $0x98] sm:$0xff]   ;;  %v1825_v24 = vld [vmem:[#allocation7 + $0x60] sm:$0xff]  }
  0x8b   :  { %v1826_v25 = vld [vmem:[#allocation7 + $0xe0] sm:$0xff]  }
  0x8d   :  { %911 = vmatpush1.bf16.msra.mxu0 %v1743_v26  ;;  %993 = vmatpush1.bf16.msra.mxu1 %v1746_v27  ;;  %v1827_v26 = vld [vmem:[#allocation7 + $0x20] sm:$0xff]  }
  0x8e   :  { %912 = vmatprep.subr.bf16.mxu0 %v1751_v28  ;;  %994 = vmatprep.subr.bf16.mxu1 %v1754_v29  ;;  %v1828_v27 = vld [vmem:[#allocation7 + $0xa0] sm:$0xff]   ;;  %v1829_v28 = vld [vmem:[#allocation7 + $0x68] sm:$0xff]  }
  0x8f   :  { %v1830_v29 = vld [vmem:[#allocation7 + $0xe8] sm:$0xff]  }
  0x91   :  { %913 = vmatpush1.bf16.msra.mxu0 %v1749_v30  ;;  %995 = vmatpush1.bf16.msra.mxu1 %v1752_v32  ;;  %v1831_v30 = vld [vmem:[#allocation7 + $0x28] sm:$0xff]   ;;  %v1833_v32 = vld [vmem:[#allocation7 + $0x70] sm:$0xff]  }
  0x92   :  { %914 = vmatprep.subr.bf16.mxu0 %v1757_v34  ;;  %996 = vmatprep.subr.bf16.mxu1 %v1760_v35  ;;  %v1835_v34 = vld [vmem:[#allocation7 + $0x30] sm:$0xff]  }
  0x93   :  { %v1836_v35 = vld [vmem:[#allocation7 + $0xb0] sm:$0xff]  }
  0x95   :  { %915 = vmatpush1.bf16.msra.mxu0 %v1755_v36  ;;  %997 = vmatpush1.bf16.msra.mxu1 %v1758_v37  ;;  %v1837_v36 = vld [vmem:[#allocation7 + $0x78] sm:$0xff]  }
  0x96   :  { %916 = vmatprep.subr.bf16.mxu0 %v1763_v38  ;;  %998 = vmatprep.subr.bf16.mxu1 %v1766_v39  ;;  %v1838_v37 = vld [vmem:[#allocation7 + $0xf8] sm:$0xff]  }
  0x97   :  { %v1839_v38 = vld [vmem:[#allocation7 + $0x38] sm:$0xff]  }
  0x98   :  { %v1840_v39 = vld [vmem:[#allocation7 + $0xb8] sm:$0xff]  }
  0x99   :  { %917 = vmatpush1.bf16.msra.mxu0 %v1761_v40  ;;  %999 = vmatpush1.bf16.msra.mxu1 %v1764_v41  ;;  %v199_v40 = vlaneseq }
  0x9a   :  { %918 = vmatprep.subr.bf16.mxu0 %v1769_v42  ;;  %1000 = vmatprep.subr.bf16.mxu1 %v1772_v43 }
  0x9b   :  { %v200_v41 = vshrl.u32 %v199_v40, 7 }
  0x9d   :  { %919 = vmatpush1.bf16.msra.mxu0 %v1767_v44  ;;  %1001 = vmatpush1.bf16.msra.mxu1 %v1770_v45  ;;  %v201_v42 = vsub.s32 0, %v200_v41  ;;  %v209_v43 = vsub.s32 2, %v200_v41  ;;  %v197_v44 = vld [vmem:[%s2029_s2] sm:$0xf]  ;;  %v205_v45 = vsub.s32 1, %v200_v41 }
  0x9e   :  { %920 = vmatprep.subr.bf16.mxu0 %v1775_v46  ;;  %1002 = vmatprep.subr.bf16.mxu1 %v1778_v47  ;;  %v213_v46 = vsub.s32 3, %v200_v41 }
  0x9f   :  { %v202_v47 = vrot.slane %v197_v44, %v201_v42 }
  0xa1   :  { %921 = vmatpush1.bf16.msra.mxu0 %v1773_v48  ;;  %1003 = vmatpush1.bf16.msra.mxu1 %v1776_v49  ;;  %v210_v48 = vrot.slane %v197_v44, %v209_v43  ;;  %v206_v49 = vrot.slane %v197_v44, %v205_v45 }
  0xa2   :  { %922 = vmatprep.subr.bf16.mxu0 %v1781_v50  ;;  %1004 = vmatprep.subr.bf16.mxu1 %v1784_v51  ;;  %v214_v50 = vrot.slane %v197_v44, %v213_v46 }
  0xa5   :  { %923 = vmatpush1.bf16.msra.mxu0 %v1779_v52  ;;  %1005 = vmatpush1.bf16.msra.mxu1 %v1782_v53 }
  0xa6   :  { %924 = vmatprep.subr.bf16.mxu0 %v1787_v54  ;;  %1006 = vmatprep.subr.bf16.mxu1 %v1790_v55 }
  0xa9   :  { %925 = vmatpush1.bf16.msra.mxu0 %v1785_v56  ;;  %1007 = vmatpush1.bf16.msra.mxu1 %v1788_v57 }
  0xaa   :  { %926 = vmatprep.subr.bf16.mxu0 %v1793_v58  ;;  %1008 = vmatprep.subr.bf16.mxu1 %v1796_v59 }
  0xad   :  { %927 = vmatpush1.bf16.msra.mxu0 %v1791_v60  ;;  %1009 = vmatpush1.bf16.msra.mxu1 %v1794_v61 }
  0xae   :  { %928 = vmatprep.subr.bf16.mxu0 %v1799_v62  ;;  %1010 = vmatprep.subr.bf16.mxu1 %v1802_v63 }
  0xb1   :  { %929 = vmatpush1.bf16.msra.mxu0 %v1797_v0  ;;  %1011 = vmatpush1.bf16.msra.mxu1 %v1800_v1 }
  0xb2   :  { %930 = vmatprep.subr.bf16.mxu0 %v1805_v2  ;;  %1012 = vmatprep.subr.bf16.mxu1 %v1808_v3 }
  0xb5   :  { %931 = vmatpush1.bf16.msra.mxu0 %v1803_v4  ;;  %1013 = vmatpush1.bf16.msra.mxu1 %v1806_v5 }
  0xb6   :  { %1553 = vmatprep.subr.bf16.mxu0 %v1809_v7  ;;  %1575 = vmatprep.subr.bf16.mxu1 %v1810_v8 }
  0xb8   :  { %933 = vmatmul.mubr.bf16.vlgmr.msra.gmra.mrb[0].mxu0 %v67_v9  ;;  %1015 = vmatmul.mubr.bf16.vlgmr.msra.gmra.mrb[0].mxu1 %v67_v9  ;;  %v1520_v9 = vld [vmem:[%s2031_s4] ss:$0 sm:$0xff] }
  0xb9   :  { %1554 = vmatpush3.bf16.msra.mxu0 %v1811_v10  ;;  %1576 = vmatpush3.bf16.msra.mxu1 %v1812_v11 }
  0xba   :  { %1555 = vmatprep.subr.bf16.mxu0 %v1813_v12  ;;  %1577 = vmatprep.subr.bf16.mxu1 %v1814_v13 }
  0xbd   :  { %1556 = vmatpush3.bf16.msra.mxu0 %v1815_v14  ;;  %1578 = vmatpush3.bf16.msra.mxu1 %v1816_v15 }
  0xbe   :  { %1557 = vmatprep.subr.bf16.mxu0 %v1817_v16  ;;  %1579 = vmatprep.subr.bf16.mxu1 %v1818_v17 }
  0xc1   :  { %1558 = vmatpush3.bf16.msra.mxu0 %v1819_v18  ;;  %1580 = vmatpush3.bf16.msra.mxu1 %v1820_v19 }
  0xc2   :  { %1559 = vmatprep.subr.bf16.mxu0 %v1821_v20  ;;  %1581 = vmatprep.subr.bf16.mxu1 %v1822_v21 }
  0xc5   :  { %1560 = vmatpush3.bf16.msra.mxu0 %v1823_v22  ;;  %1582 = vmatpush3.bf16.msra.mxu1 %v1824_v23 }
  0xc6   :  { %1561 = vmatprep.subr.bf16.mxu0 %v1825_v24  ;;  %1583 = vmatprep.subr.bf16.mxu1 %v1826_v25 }
  0xc9   :  { %1562 = vmatpush3.bf16.msra.mxu0 %v1827_v26  ;;  %1584 = vmatpush3.bf16.msra.mxu1 %v1828_v27 }
  0xca   :  { %1563 = vmatprep.subr.bf16.mxu0 %v1829_v28  ;;  %1585 = vmatprep.subr.bf16.mxu1 %v1830_v29 }
  0xcd   :  { %1564 = vmatpush3.bf16.msra.mxu0 %v1831_v30  ;;  %1586 = vmatpush3.bf16.msra.mxu1 %v1832_v31 }
  0xce   :  { %1565 = vmatprep.subr.bf16.mxu0 %v1833_v32  ;;  %1587 = vmatprep.subr.bf16.mxu1 %v1834_v33 }
  0xd1   :  { %1566 = vmatpush3.bf16.msra.mxu0 %v1835_v34  ;;  %1588 = vmatpush3.bf16.msra.mxu1 %v1836_v35 }
  0xd2   :  { %1567 = vmatprep.subr.bf16.mxu0 %v1837_v36  ;;  %1589 = vmatprep.subr.bf16.mxu1 %v1838_v37 }
  0xd5   :  { %1568 = vmatpush3.bf16.msra.mxu0 %v1839_v38  ;;  %1590 = vmatpush3.bf16.msra.mxu1 %v1840_v39 }
 0x18b   :  { %v934_v51 = vpop.f32.mrb[0].mxu0  ;;  %v1016_v52 = vpop.f32.mrb[0].mxu1 }
 0x18c   :  { %v1597_v53 = vadd.f32 %v934_v51, %v202_v47  ;;  %v1599_v54 = vadd.f32 %v1016_v52, %v210_v48  ;;  %v936_v55 = vpop.f32.mrb[1].mxu0  ;;  %v1018_v56 = vpop.f32.mrb[1].mxu1 }
 0x18d   :  { %v1598_v57 = vadd.f32 %v936_v55, %v206_v49  ;;  %v1600_v58 = vadd.f32 %v1018_v56, %v214_v50  ;;  %v938_v59 = vpop.f32.mrb[2].mxu0  ;;  %v1020_v60 = vpop.f32.mrb[2].mxu1 }
 0x18e   :  { %v1023_v61 = vmax.f32 %v1597_v53, 0.0  ;;  %v1025_v62 = vmax.f32 %v1599_v54, 0.0  ;;  %v939_v63 = vpop.f32.mrb[3].mxu0  ;;  %v1021_v0 = vpop.f32.mrb[3].mxu1 }
 0x18f   :  { %v1024_v1 = vmax.f32 %v1598_v57, 0.0  ;;  %v1026_v2 = vmax.f32 %v1600_v58, 0.0 }
 0x190   :  { %v1027_v5 = vpack.c.bf16 %v1023_v61, %v1023_v61  ;;  %v1029_v6 = vpack.c.bf16 %v1025_v62, %v1025_v62 }
 0x191   :  { %v1028_v3 = vpack.c.bf16 %v1024_v1, %v1024_v1  ;;  %v1030_v4 = vpack.c.bf16 %v1026_v2, %v1026_v2 }
 0x193   :  { %1326 = vmatprep.mubr.bf16.mxu0 %v1028_v3  ;;  %1366 = vmatprep.mubr.bf16.mxu1 %v1030_v4 }
 0x194   :  { %1327 = vmatmul.mubr.bf16.vlgmr.msra.gmra.mrb[4].mxu0 %v1027_v5  ;;  %1367 = vmatmul.mubr.bf16.vlgmr.msra.gmra.mrb[4].mxu1 %v1029_v6 }
 0x267   :  { %v1569_v7 = vpop.f32.mrb[4].mxu0  ;;  %v1591_v8 = vpop.f32.mrb[4].mxu1 }
 0x268   :  { %v1570_v10 = vpop.f32.mrb[5].mxu0  ;;  %v1592_v11 = vpop.f32.mrb[5].mxu1 }
 0x269   :  { %v1571_v12 = vadd.f32 %v1570_v10, %v1569_v7  ;;  %v1593_v13 = vadd.f32 %v1592_v11, %v1591_v8  ;;  %v1572_v14 = vpop.f32.mrb[6].mxu0  ;;  %v1594_v15 = vpop.f32.mrb[6].mxu1 }
 0x26a   :  { %v1573_v16 = vpop.f32.mrb[7].mxu0  ;;  %v1595_v17 = vpop.f32.mrb[7].mxu1 }
 0x26b   :  { %v1329_v18 = vadd.f32 %v1571_v12, %v1520_v9 }
 0x26d   :  { %v1369_v19 = vadd.f32 %v1593_v13, %v1329_v18 }
 0x26f   :  { %v1374_v20 = vpack.c.bf16 %v1369_v19, %v1369_v19 }
 0x271   :  { %1375 = vst [vmem:[#allocation8] sm:$0xf] %v1374_v20 }
 0x272   :  { %1918 = shalt.err (!%p1915_p0)
}
 0x273   :  { %s1919_s12 = scalar_lea.hbm %s2032_s5, 64 }
 0x274   :  { %p1920_p1 = scmp.ne.s32.totalorder %s2032_s5, %s1919_s12  ;;  %p1923_p2 = scmp.lt.u32.totalorder %s1919_s12, %s2032_s5 }
 0x276   :  { %p1925_p3 = pnand %p1923_p2, %p1920_p1 }
 0x278   :  { %1928 = shalt.err (!%p1925_p3)
}
 0x279   :  { %1385 = dma.vmem_to_hbm [thread:$0]  %s1383_s9, 64, %s2032_s5, [#allocation4]  }
 0x27a   :  { %1933 = dma.done.wait [#allocation4], 64  }
 0x27b   :  { %1934 = vsyncadd [#allocation4], 4294967232 }
 0x27c   :  { %1389 = vsyncpa [#allocation3], 1 }
 0x27d   :  { %1390 = vsyncpa [#allocation6], 1 }
 0x27e   :  { %1391 = vsyncpa [#allocation4], 1 }

// kernel: tpu_custom_call.1
= control target key start
LH: loop header
LB: loop body
LE: loop exit
PB: predicated region body
PF: predicated region fallthrough
CT: control target
= control target key end

     0   :  { %10 = vsyncpa [#allocation3], 0  ;;  %s2027_s0 = inlined_call_operand.hbm [shape: f32[8,512], index: 0, kind: input, shape index: {}]   ;;  %s2028_s1 = inlined_call_operand.hbm [shape: bf16[512,512], index: 1, kind: input, shape index: {}]   ;;  %s2029_s2 = inlined_call_operand.vmem [shape: f32[1,512], index: 2, kind: input, shape index: {}]   ;;  %s2030_s3 = inlined_call_operand.hbm [shape: bf16[512,128], index: 3, kind: input, shape index: {}]   ;;  %s2031_s4 = inlined_call_operand.vmem [shape: f32[1,128], index: 4, kind: input, shape index: {}]   ;;  %s2032_s5 = inlined_call_operand.hbm [shape: bf16[8,128], index: 5, kind: output, shape index: {}]  }
   0x1   :  { %11 = vsyncpa [#allocation6], 0 }
   0x2   :  { %12 = vsyncpa [#allocation4], 0  ;;  %s1935_s18 = smov [#allocation5]   ;;  %s1841_s22 = scalar_lea.hbm %s2028_s1, 16384 }
   0x3   :  { %s28_s19 = sshll.u32 %s1935_s18, 4  ;;  %p1842_p0 = scmp.ne.s32.totalorder %s2028_s1, %s1841_s22  ;;  %s29_s19 = int_to_ptr.vmem [resolvable:$true] %s28_s19 }
   0x4   :  { %p1845_p1 = scmp.lt.u32.totalorder %s1841_s22, %s2028_s1 }
   0x6   :  { %p1847_p2 = pnand %p1845_p1, %p1842_p0 }
   0x8   :  { %1850 = shalt.err (!%p1847_p2)
}
   0x9   :  { %s1851_s27 = scalar_lea.vmem %s29_s19, 16384  ;;  %p1856_p4 = scmp.lt.s32.totalorder %s29_s19, %s29_s19 }
   0xa   :  { %p1852_p3 = scmp.ne.s32.totalorder %s29_s19, %s1851_s27  ;;  %p1857_p5 = scmp.lt.s32.totalorder %s1851_s27, %s1851_s27 }
   0xc   :  { %p1858_p6 = por %p1857_p5, %p1856_p4 }
   0xe   :  { %p1859_p7 = pnand %p1858_p6, %p1852_p3 }
  0x10   :  { %1862 = shalt.err (!%p1859_p7)
}
  0x11   :  { %s1936_s28 = smov 256   ;;  %s1937_s29 = smov 16  }
  0x12   :  { %34 = dma.hbm_to_vmem [thread:$0]  %s2028_s1, 16384, %s29_s19, [#allocation6], %s1936_s28, %s1936_s28, %s1937_s29  }
  0x13   :  { %s1938_s7 = smov [#allocation2]   ;;  %s1939_s9 = smov [#allocation7]  }
  0x14   :  { %s19_s8 = sshll.u32 %s1938_s7, 4  ;;  %s42_s10 = sshll.u32 %s1939_s9, 4  ;;  %s20_s8 = int_to_ptr.vmem [resolvable:$true] %s19_s8  ;;  %s43_s10 = int_to_ptr.vmem [resolvable:$true] %s42_s10 }
  0x15   :  { %s1863_s13 = scalar_lea.hbm %s2027_s0, 512 }
  0x16   :  { %p1864_p8 = scmp.ne.s32.totalorder %s2027_s0, %s1863_s13  ;;  %p1867_p9 = scmp.lt.u32.totalorder %s1863_s13, %s2027_s0 }
  0x18   :  { %p1869_p10 = pnand %p1867_p9, %p1864_p8 }
  0x1a   :  { %1872 = shalt.err (!%p1869_p10)
}
  0x1b   :  { %s1873_s1 = scalar_lea.vmem %s20_s8, 512  ;;  %p1878_p12 = scmp.lt.s32.totalorder %s20_s8, %s20_s8 }
  0x1c   :  { %p1874_p11 = scmp.ne.s32.totalorder %s20_s8, %s1873_s1  ;;  %p1879_p13 = scmp.lt.s32.totalorder %s1873_s1, %s1873_s1 }
  0x1e   :  { %p1880_p0 = por %p1879_p13, %p1878_p12 }
  0x20   :  { %p1881_p1 = pnand %p1880_p0, %p1874_p11 }
  0x22   :  { %1884 = shalt.err (!%p1881_p1)
}
  0x23   :  { %22 = dma.hbm_to_vmem [thread:$0]  %s2027_s0, 512, %s20_s8, [#allocation3]  }
  0x24   :  { %s1885_s22 = scalar_lea.hbm %s2030_s3, 4096 }
  0x25   :  { %p1886_p2 = scmp.ne.s32.totalorder %s2030_s3, %s1885_s22  ;;  %p1889_p3 = scmp.lt.u32.totalorder %s1885_s22, %s2030_s3 }
  0x27   :  { %p1891_p4 = pnand %p1889_p3, %p1886_p2 }
  0x29   :  { %1894 = shalt.err (!%p1891_p4)
}
  0x2a   :  { %s1895_s27 = scalar_lea.vmem %s43_s10, 4096  ;;  %p1900_p6 = scmp.lt.s32.totalorder %s43_s10, %s43_s10 }
  0x2b   :  { %p1896_p5 = scmp.ne.s32.totalorder %s43_s10, %s1895_s27  ;;  %p1901_p7 = scmp.lt.s32.totalorder %s1895_s27, %s1895_s27 }
  0x2d   :  { %p1902_p8 = por %p1901_p7, %p1900_p6 }
  0x2f   :  { %p1903_p9 = pnand %p1902_p8, %p1896_p5 }
  0x31   :  { %1906 = shalt.err (!%p1903_p9)
}
  0x32   :  { %s1940_s0 = smov 64   ;;  %s1941_s28 = smov 4  }
  0x33   :  { %48 = dma.hbm_to_vmem [thread:$0]  %s2030_s3, 4096, %s43_s10, [#allocation6], %s1940_s0, %s1940_s0, %s1941_s28  }
  0x34   :  { %1929 = dma.done.wait [#allocation3], 512  }
  0x35   :  { %1930 = vsyncadd [#allocation3], 4294966784 }
  0x36   :  { %1931 = dma.done.wait [#allocation6], 20480  }
  0x37   :  { %1932 = vsyncadd [#allocation6], 4294946816  ;;  %v1617_v0 = vld [vmem:[#allocation5 + $0x4] ss:$16 sps:$4 sm:$0xff]   ;;  %v1619_v1 = vld [vmem:[#allocation5 + $0xc] ss:$16 sps:$4 sm:$0xff]  }
  0x38   :  { %859 = vmatprep.subr.bf16.mxu0 %v1617_v0  ;;  %v1621_v2 = vld [vmem:[#allocation5] ss:$16 sps:$4 sm:$0xff]   ;;  %v1622_v3 = vld [vmem:[#allocation5 + $0x8] ss:$16 sps:$4 sm:$0xff]   ;;  %941 = vmatprep.subr.bf16.mxu1 %v1619_v1  ;;  %v1623_v4 = vld [vmem:[#allocation5 + $0x24] ss:$16 sps:$4 sm:$0xff]  }
  0x39   :  { %860 = vmatpush1.bf16.msra.mxu0 %v1621_v2  ;;  %942 = vmatpush1.bf16.msra.mxu1 %v1622_v3  ;;  %v1625_v5 = vld [vmem:[#allocation5 + $0x2c] ss:$16 sps:$4 sm:$0xff]   ;;  %v1627_v6 = vld [vmem:[#allocation5 + $0x20] ss:$16 sps:$4 sm:$0xff]   ;;  %v1628_v7 = vld [vmem:[#allocation5 + $0x28] ss:$16 sps:$4 sm:$0xff]  }
  0x3a   :  { %861 = vmatprep.subr.bf16.mxu0 %v1623_v4  ;;  %943 = vmatprep.subr.bf16.mxu1 %v1625_v5  ;;  %v1629_v8 = vld [vmem:[#allocation5 + $0x44] ss:$16 sps:$4 sm:$0xff]   ;;  %v1631_v9 = vld [vmem:[#allocation5 + $0x4c] ss:$16 sps:$4 sm:$0xff]   ;;  %v1633_v10 = vld [vmem:[#allocation5 + $0x40] ss:$16 sps:$4 sm:$0xff]  }
  0x3b   :  { %v1634_v11 = vld [vmem:[#allocation5 + $0x48] ss:$16 sps:$4 sm:$0xff]   ;;  %v1635_v12 = vld [vmem:[#allocation5 + $0x64] ss:$16 sps:$4 sm:$0xff]   ;;  %v1637_v13 = vld [vmem:[#allocation5 + $0x6c] ss:$16 sps:$4 sm:$0xff]  }
  0x3c   :  { %v1639_v14 = vld [vmem:[#allocation5 + $0x60] ss:$16 sps:$4 sm:$0xff]   ;;  %v1640_v15 = vld [vmem:[#allocation5 + $0x68] ss:$16 sps:$4 sm:$0xff]   ;;  %v1641_v16 = vld [vmem:[#allocation5 + $0x84] ss:$16 sps:$4 sm:$0xff]  }
  0x3d   :  { %862 = vmatpush1.bf16.msra.mxu0 %v1627_v6  ;;  %944 = vmatpush1.bf16.msra.mxu1 %v1628_v7  ;;  %v1643_v17 = vld [vmem:[#allocation5 + $0x8c] ss:$16 sps:$4 sm:$0xff]   ;;  %v1645_v18 = vld [vmem:[#allocation5 + $0x80] ss:$16 sps:$4 sm:$0xff]   ;;  %v1646_v19 = vld [vmem:[#allocation5 + $0x88] ss:$16 sps:$4 sm:$0xff]  }
  0x3e   :  { %863 = vmatprep.subr.bf16.mxu0 %v1629_v8  ;;  %945 = vmatprep.subr.bf16.mxu1 %v1631_v9  ;;  %v1647_v20 = vld [vmem:[#allocation5 + $0xa4] ss:$16 sps:$4 sm:$0xff]   ;;  %v1649_v21 = vld [vmem:[#allocation5 + $0xac] ss:$16 sps:$4 sm:$0xff]   ;;  %v1651_v22 = vld [vmem:[#allocation5 + $0xa0] ss:$16 sps:$4 sm:$0xff]  }
  0x3f   :  { %v1652_v23 = vld [vmem:[#allocation5 + $0xa8] ss:$16 sps:$4 sm:$0xff]   ;;  %v1653_v24 = vld [vmem:[#allocation5 + $0xc4] ss:$16 sps:$4 sm:$0xff]   ;;  %v1655_v25 = vld [vmem:[#allocation5 + $0xcc] ss:$16 sps:$4 sm:$0xff]  }
  0x40   :  { %v1657_v26 = vld [vmem:[#allocation5 + $0xc0] ss:$16 sps:$4 sm:$0xff]   ;;  %v1658_v27 = vld [vmem:[#allocation5 + $0xc8] ss:$16 sps:$4 sm:$0xff]   ;;  %v1659_v28 = vld [vmem:[#allocation5 + $0xe4] ss:$16 sps:$4 sm:$0xff]  }
  0x41   :  { %864 = vmatpush1.bf16.msra.mxu0 %v1633_v10  ;;  %946 = vmatpush1.bf16.msra.mxu1 %v1634_v11  ;;  %v1661_v29 = vld [vmem:[#allocation5 + $0xec] ss:$16 sps:$4 sm:$0xff]   ;;  %v1663_v30 = vld [vmem:[#allocation5 + $0xe0] ss:$16 sps:$4 sm:$0xff]   ;;  %v1664_v31 = vld [vmem:[#allocation5 + $0xe8] ss:$16 sps:$4 sm:$0xff]  }
  0x42   :  { %865 = vmatprep.subr.bf16.mxu0 %v1635_v12  ;;  %947 = vmatprep.subr.bf16.mxu1 %v1637_v13  ;;  %v1665_v32 = vld [vmem:[#allocation5 + $0x104] ss:$16 sps:$4 sm:$0xff]   ;;  %v1667_v33 = vld [vmem:[#allocation5 + $0x10c] ss:$16 sps:$4 sm:$0xff]   ;;  %v1669_v34 = vld [vmem:[#allocation5 + $0x100] ss:$16 sps:$4 sm:$0xff]  }
  0x43   :  { %v1670_v35 = vld [vmem:[#allocation5 + $0x108] ss:$16 sps:$4 sm:$0xff]   ;;  %v1671_v36 = vld [vmem:[#allocation5 + $0x124] ss:$16 sps:$4 sm:$0xff]   ;;  %v1673_v37 = vld [vmem:[#allocation5 + $0x12c] ss:$16 sps:$4 sm:$0xff]  }
  0x44   :  { %v1675_v38 = vld [vmem:[#allocation5 + $0x120] ss:$16 sps:$4 sm:$0xff]   ;;  %v1676_v39 = vld [vmem:[#allocation5 + $0x128] ss:$16 sps:$4 sm:$0xff]   ;;  %v1677_v40 = vld [vmem:[#allocation5 + $0x144] ss:$16 sps:$4 sm:$0xff]  }
  0x45   :  { %866 = vmatpush1.bf16.msra.mxu0 %v1639_v14  ;;  %948 = vmatpush1.bf16.msra.mxu1 %v1640_v15  ;;  %v1679_v41 = vld [vmem:[#allocation5 + $0x14c] ss:$16 sps:$4 sm:$0xff]   ;;  %v1681_v42 = vld [vmem:[#allocation5 + $0x140] ss:$16 sps:$4 sm:$0xff]   ;;  %v1682_v43 = vld [vmem:[#allocation5 + $0x148] ss:$16 sps:$4 sm:$0xff]  }
  0x46   :  { %867 = vmatprep.subr.bf16.mxu0 %v1641_v16  ;;  %949 = vmatprep.subr.bf16.mxu1 %v1643_v17  ;;  %v1683_v44 = vld [vmem:[#allocation5 + $0x164] ss:$16 sps:$4 sm:$0xff]   ;;  %v1685_v45 = vld [vmem:[#allocation5 + $0x16c] ss:$16 sps:$4 sm:$0xff]   ;;  %v1687_v47 = vld [vmem:[#allocation5 + $0x160] ss:$16 sps:$4 sm:$0xff]  }
  0x47   :  { %v62_v46 = vld [vmem:[#allocation2 + $0x8] sm:$0xff]  ;;  %v1689_v50 = vld [vmem:[#allocation5 + $0x184] ss:$16 sps:$4 sm:$0xff]   ;;  %v1693_v52 = vld [vmem:[#allocation5 + $0x180] ss:$16 sps:$4 sm:$0xff]   ;;  %s1942_s8 = smov [#allocation8]  }
  0x48   :  { %v66_v48 = vpack.c.bf16 %v62_v46, %v62_v46  ;;  %v1688_v49 = vld [vmem:[#allocation5 + $0x168] ss:$16 sps:$4 sm:$0xff]   ;;  %v1691_v51 = vld [vmem:[#allocation5 + $0x18c] ss:$16 sps:$4 sm:$0xff]   ;;  %v1695_v54 = vld [vmem:[#allocation5 + $0x1a4] ss:$16 sps:$4 sm:$0xff]  }
  0x49   :  { %868 = vmatpush1.bf16.msra.mxu0 %v1645_v18  ;;  %950 = vmatpush1.bf16.msra.mxu1 %v1646_v19  ;;  %v1694_v53 = vld [vmem:[#allocation5 + $0x188] ss:$16 sps:$4 sm:$0xff]   ;;  %v1697_v55 = vld [vmem:[#allocation5 + $0x1ac] ss:$16 sps:$4 sm:$0xff]   ;;  %v1699_v56 = vld [vmem:[#allocation5 + $0x1a0] ss:$16 sps:$4 sm:$0xff]  }
  0x4a   :  { %869 = vmatprep.subr.bf16.mxu0 %v1647_v20  ;;  %951 = vmatprep.subr.bf16.mxu1 %v1649_v21  ;;  %v1700_v57 = vld [vmem:[#allocation5 + $0x1a8] ss:$16 sps:$4 sm:$0xff]   ;;  %v1701_v58 = vld [vmem:[#allocation5 + $0x1c4] ss:$16 sps:$4 sm:$0xff]   ;;  %v1703_v59 = vld [vmem:[#allocation5 + $0x1cc] ss:$16 sps:$4 sm:$0xff]  }
  0x4b   :  { %891 = vmatprep.mubr.bf16.mxu0 %v66_v48  ;;  %973 = vmatprep.mubr.bf16.mxu1 %v66_v48  ;;  %v1705_v60 = vld [vmem:[#allocation5 + $0x1c0] ss:$16 sps:$4 sm:$0xff]   ;;  %v1706_v61 = vld [vmem:[#allocation5 + $0x1c8] ss:$16 sps:$4 sm:$0xff]   ;;  %v1707_v62 = vld [vmem:[#allocation5 + $0x1e4] ss:$16 sps:$4 sm:$0xff]  }
  0x4c   :  { %v1709_v63 = vld [vmem:[#allocation5 + $0x1ec] ss:$16 sps:$4 sm:$0xff]   ;;  %v1711_v0 = vld [vmem:[#allocation5 + $0x1e0] ss:$16 sps:$4 sm:$0xff]   ;;  %v1712_v1 = vld [vmem:[#allocation5 + $0x1e8] ss:$16 sps:$4 sm:$0xff]  }
  0x4d   :  { %870 = vmatpush1.bf16.msra.mxu0 %v1651_v22  ;;  %952 = vmatpush1.bf16.msra.mxu1 %v1652_v23  ;;  %v61_v2 = vld [vmem:[#allocation2] sm:$0xff]  ;;  %v1718_v4 = vld [vmem:[#allocation5 + $0x20c] ss:$16 sps:$4 sm:$0xff]   ;;  %v1716_v7 = vld [vmem:[#allocation5 + $0x208] ss:$16 sps:$4 sm:$0xff]   ;;  %s1382_s9 = sshll.u32 %s1942_s8, 4  ;;  %s1383_s9 = int_to_ptr.vmem [resolvable:$true] %s1382_s9 }
  0x4e   :  { %871 = vmatprep.subr.bf16.mxu0 %v1653_v24  ;;  %953 = vmatprep.subr.bf16.mxu1 %v1655_v25  ;;  %v1715_v3 = vld [vmem:[#allocation5 + $0x204] ss:$16 sps:$4 sm:$0xff]   ;;  %v65_v5 = vpack.c.bf16 %v61_v2, %v61_v2  ;;  %v1713_v6 = vld [vmem:[#allocation5 + $0x200] ss:$16 sps:$4 sm:$0xff]   ;;  %v1724_v9 = vld [vmem:[#allocation5 + $0x22c] ss:$16 sps:$4 sm:$0xff]   ;;  %p1912_p11 = scmp.lt.s32.totalorder %s1383_s9, %s1383_s9 }
  0x4f   :  { %v1721_v8 = vld [vmem:[#allocation5 + $0x224] ss:$16 sps:$4 sm:$0xff]   ;;  %v1719_v10 = vld [vmem:[#allocation5 + $0x220] ss:$16 sps:$4 sm:$0xff]   ;;  %v1722_v11 = vld [vmem:[#allocation5 + $0x228] ss:$16 sps:$4 sm:$0xff]  }
  0x50   :  { %v1727_v12 = vld [vmem:[#allocation5 + $0x244] ss:$16 sps:$4 sm:$0xff]   ;;  %v1730_v13 = vld [vmem:[#allocation5 + $0x24c] ss:$16 sps:$4 sm:$0xff]   ;;  %v1725_v14 = vld [vmem:[#allocation5 + $0x240] ss:$16 sps:$4 sm:$0xff]  }
  0x51   :  { %872 = vmatpush1.bf16.msra.mxu0 %v1657_v26  ;;  %954 = vmatpush1.bf16.msra.mxu1 %v1658_v27  ;;  %v1728_v15 = vld [vmem:[#allocation5 + $0x248] ss:$16 sps:$4 sm:$0xff]   ;;  %v1733_v16 = vld [vmem:[#allocation5 + $0x264] ss:$16 sps:$4 sm:$0xff]   ;;  %v1736_v17 = vld [vmem:[#allocation5 + $0x26c] ss:$16 sps:$4 sm:$0xff]  }
  0x52   :  { %873 = vmatprep.subr.bf16.mxu0 %v1659_v28  ;;  %955 = vmatprep.subr.bf16.mxu1 %v1661_v29  ;;  %v1731_v18 = vld [vmem:[#allocation5 + $0x260] ss:$16 sps:$4 sm:$0xff]   ;;  %v1734_v19 = vld [vmem:[#allocation5 + $0x268] ss:$16 sps:$4 sm:$0xff]   ;;  %v1739_v20 = vld [vmem:[#allocation5 + $0x284] ss:$16 sps:$4 sm:$0xff]  }
  0x53   :  { %v1742_v21 = vld [vmem:[#allocation5 + $0x28c] ss:$16 sps:$4 sm:$0xff]   ;;  %v1737_v22 = vld [vmem:[#allocation5 + $0x280] ss:$16 sps:$4 sm:$0xff]   ;;  %v1740_v23 = vld [vmem:[#allocation5 + $0x288] ss:$16 sps:$4 sm:$0xff]  }
  0x54   :  { %v1745_v24 = vld [vmem:[#allocation5 + $0x2a4] ss:$16 sps:$4 sm:$0xff]   ;;  %v1748_v25 = vld [vmem:[#allocation5 + $0x2ac] ss:$16 sps:$4 sm:$0xff]   ;;  %v1743_v26 = vld [vmem:[#allocation5 + $0x2a0] ss:$16 sps:$4 sm:$0xff]  }
  0x55   :  { %874 = vmatpush1.bf16.msra.mxu0 %v1663_v30  ;;  %956 = vmatpush1.bf16.msra.mxu1 %v1664_v31  ;;  %v1746_v27 = vld [vmem:[#allocation5 + $0x2a8] ss:$16 sps:$4 sm:$0xff]   ;;  %v1751_v28 = vld [vmem:[#allocation5 + $0x2c4] ss:$16 sps:$4 sm:$0xff]   ;;  %v1754_v29 = vld [vmem:[#allocation5 + $0x2cc] ss:$16 sps:$4 sm:$0xff]  }
  0x56   :  { %875 = vmatprep.subr.bf16.mxu0 %v1665_v32  ;;  %957 = vmatprep.subr.bf16.mxu1 %v1667_v33  ;;  %v1749_v30 = vld [vmem:[#allocation5 + $0x2c0] ss:$16 sps:$4 sm:$0xff]   ;;  %v64_v31 = vld [vmem:[#allocation2 + $0x18] sm:$0xff]  ;;  %v1775_v46 = vld [vmem:[#allocation5 + $0x344] ss:$16 sps:$4 sm:$0xff]   ;;  %s1907_s10 = scalar_lea.vmem %s1383_s9, 64 }
  0x57   :  { %v1752_v32 = vld [vmem:[#allocation5 + $0x2c8] ss:$16 sps:$4 sm:$0xff]   ;;  %v68_v33 = vpack.c.bf16 %v64_v31, %v64_v31  ;;  %v1773_v48 = vld [vmem:[#allocation5 + $0x340] ss:$16 sps:$4 sm:$0xff]   ;;  %v1805_v2 = vld [vmem:[#allocation5 + $0x3e4] ss:$16 sps:$4 sm:$0xff]   ;;  %p1908_p10 = scmp.ne.s32.totalorder %s1383_s9, %s1907_s10  ;;  %p1913_p12 = scmp.lt.s32.totalorder %s1907_s10, %s1907_s10 }
  0x58   :  { %v1832_v31 = vld [vmem:[#allocation7 + $0xa8] sm:$0xff]  }
  0x59   :  { %876 = vmatpush1.bf16.msra.mxu0 %v1669_v34  ;;  %958 = vmatpush1.bf16.msra.mxu1 %v1670_v35  ;;  %v1757_v34 = vld [vmem:[#allocation5 + $0x2e4] ss:$16 sps:$4 sm:$0xff]   ;;  %v1760_v35 = vld [vmem:[#allocation5 + $0x2ec] ss:$16 sps:$4 sm:$0xff]   ;;  %p1914_p13 = por %p1913_p12, %p1912_p11 }
  0x5a   :  { %877 = vmatprep.subr.bf16.mxu0 %v1671_v36  ;;  %959 = vmatprep.subr.bf16.mxu1 %v1673_v37  ;;  %v1755_v36 = vld [vmem:[#allocation5 + $0x2e0] ss:$16 sps:$4 sm:$0xff]   ;;  %v1758_v37 = vld [vmem:[#allocation5 + $0x2e8] ss:$16 sps:$4 sm:$0xff]  }
  0x5b   :  { %p1915_p0 = pnand %p1914_p13, %p1908_p10 }
  0x5d   :  { %878 = vmatpush1.bf16.msra.mxu0 %v1675_v38  ;;  %960 = vmatpush1.bf16.msra.mxu1 %v1676_v39  ;;  %v1763_v38 = vld [vmem:[#allocation5 + $0x304] ss:$16 sps:$4 sm:$0xff]   ;;  %v1766_v39 = vld [vmem:[#allocation5 + $0x30c] ss:$16 sps:$4 sm:$0xff]  }
  0x5e   :  { %879 = vmatprep.subr.bf16.mxu0 %v1677_v40  ;;  %961 = vmatprep.subr.bf16.mxu1 %v1679_v41  ;;  %v1761_v40 = vld [vmem:[#allocation5 + $0x300] ss:$16 sps:$4 sm:$0xff]   ;;  %v1764_v41 = vld [vmem:[#allocation5 + $0x308] ss:$16 sps:$4 sm:$0xff]  }
  0x61   :  { %880 = vmatpush1.bf16.msra.mxu0 %v1681_v42  ;;  %962 = vmatpush1.bf16.msra.mxu1 %v1682_v43  ;;  %v1769_v42 = vld [vmem:[#allocation5 + $0x324] ss:$16 sps:$4 sm:$0xff]   ;;  %v1772_v43 = vld [vmem:[#allocation5 + $0x32c] ss:$16 sps:$4 sm:$0xff]  }
  0x62   :  { %881 = vmatprep.subr.bf16.mxu0 %v1683_v44  ;;  %963 = vmatprep.subr.bf16.mxu1 %v1685_v45  ;;  %v1767_v44 = vld [vmem:[#allocation5 + $0x320] ss:$16 sps:$4 sm:$0xff]   ;;  %v1770_v45 = vld [vmem:[#allocation5 + $0x328] ss:$16 sps:$4 sm:$0xff]  }
  0x65   :  { %882 = vmatpush1.bf16.msra.mxu0 %v1687_v47  ;;  %964 = vmatpush1.bf16.msra.mxu1 %v1688_v49  ;;  %v1778_v47 = vld [vmem:[#allocation5 + $0x34c] ss:$16 sps:$4 sm:$0xff]   ;;  %v1776_v49 = vld [vmem:[#allocation5 + $0x348] ss:$16 sps:$4 sm:$0xff]  }
  0x66   :  { %883 = vmatprep.subr.bf16.mxu0 %v1689_v50  ;;  %965 = vmatprep.subr.bf16.mxu1 %v1691_v51  ;;  %v1781_v50 = vld [vmem:[#allocation5 + $0x364] ss:$16 sps:$4 sm:$0xff]   ;;  %v1784_v51 = vld [vmem:[#allocation5 + $0x36c] ss:$16 sps:$4 sm:$0xff]  }
  0x69   :  { %884 = vmatpush1.bf16.msra.mxu0 %v1693_v52  ;;  %966 = vmatpush1.bf16.msra.mxu1 %v1694_v53  ;;  %v1779_v52 = vld [vmem:[#allocation5 + $0x360] ss:$16 sps:$4 sm:$0xff]   ;;  %v1782_v53 = vld [vmem:[#allocation5 + $0x368] ss:$16 sps:$4 sm:$0xff]  }
  0x6a   :  { %885 = vmatprep.subr.bf16.mxu0 %v1695_v54  ;;  %967 = vmatprep.subr.bf16.mxu1 %v1697_v55  ;;  %v1787_v54 = vld [vmem:[#allocation5 + $0x384] ss:$16 sps:$4 sm:$0xff]   ;;  %v1790_v55 = vld [vmem:[#allocation5 + $0x38c] ss:$16 sps:$4 sm:$0xff]  }
  0x6d   :  { %886 = vmatpush1.bf16.msra.mxu0 %v1699_v56  ;;  %968 = vmatpush1.bf16.msra.mxu1 %v1700_v57  ;;  %v1785_v56 = vld [vmem:[#allocation5 + $0x380] ss:$16 sps:$4 sm:$0xff]   ;;  %v1788_v57 = vld [vmem:[#allocation5 + $0x388] ss:$16 sps:$4 sm:$0xff]  }
  0x6e   :  { %887 = vmatprep.subr.bf16.mxu0 %v1701_v58  ;;  %969 = vmatprep.subr.bf16.mxu1 %v1703_v59  ;;  %v1793_v58 = vld [vmem:[#allocation5 + $0x3a4] ss:$16 sps:$4 sm:$0xff]   ;;  %v1796_v59 = vld [vmem:[#allocation5 + $0x3ac] ss:$16 sps:$4 sm:$0xff]  }
  0x71   :  { %888 = vmatpush1.bf16.msra.mxu0 %v1705_v60  ;;  %970 = vmatpush1.bf16.msra.mxu1 %v1706_v61  ;;  %v1791_v60 = vld [vmem:[#allocation5 + $0x3a0] ss:$16 sps:$4 sm:$0xff]   ;;  %v1794_v61 = vld [vmem:[#allocation5 + $0x3a8] ss:$16 sps:$4 sm:$0xff]  }
  0x72   :  { %889 = vmatprep.subr.bf16.mxu0 %v1707_v62  ;;  %971 = vmatprep.subr.bf16.mxu1 %v1709_v63  ;;  %v1799_v62 = vld [vmem:[#allocation5 + $0x3c4] ss:$16 sps:$4 sm:$0xff]   ;;  %v1802_v63 = vld [vmem:[#allocation5 + $0x3cc] ss:$16 sps:$4 sm:$0xff]  }
  0x75   :  { %890 = vmatpush1.bf16.msra.mxu0 %v1711_v0  ;;  %972 = vmatpush1.bf16.msra.mxu1 %v1712_v1  ;;  %v1797_v0 = vld [vmem:[#allocation5 + $0x3c0] ss:$16 sps:$4 sm:$0xff]   ;;  %v1800_v1 = vld [vmem:[#allocation5 + $0x3c8] ss:$16 sps:$4 sm:$0xff]  }
  0x76   :  { %900 = vmatprep.subr.bf16.mxu0 %v1715_v3  ;;  %982 = vmatprep.subr.bf16.mxu1 %v1718_v4  ;;  %v1808_v3 = vld [vmem:[#allocation5 + $0x3ec] ss:$16 sps:$4 sm:$0xff]   ;;  %v1803_v4 = vld [vmem:[#allocation5 + $0x3e0] ss:$16 sps:$4 sm:$0xff]  }
  0x78   :  { %892 = vmatmul.mubr.bf16.vlgmr.msra.gmra.mrb[0].mxu0 %v65_v5  ;;  %974 = vmatmul.mubr.bf16.vlgmr.msra.gmra.mrb[0].mxu1 %v65_v5  ;;  %v1806_v5 = vld [vmem:[#allocation5 + $0x3e8] ss:$16 sps:$4 sm:$0xff]  }
  0x79   :  { %901 = vmatpush1.bf16.msra.mxu0 %v1713_v6  ;;  %983 = vmatpush1.bf16.msra.mxu1 %v1716_v7  ;;  %v63_v6 = vld [vmem:[#allocation2 + $0x10] sm:$0xff]  ;;  %v1809_v7 = vld [vmem:[#allocation7 + $0x40] sm:$0xff]  }
  0x7a   :  { %902 = vmatprep.subr.bf16.mxu0 %v1721_v8  ;;  %984 = vmatprep.subr.bf16.mxu1 %v1724_v9  ;;  %v1810_v8 = vld [vmem:[#allocation7 + $0xc0] sm:$0xff]   ;;  %v67_v9 = vpack.c.bf16 %v63_v6, %v63_v6 }
  0x7b   :  { %932 = vmatprep.mubr.bf16.mxu0 %v68_v33  ;;  %1014 = vmatprep.mubr.bf16.mxu1 %v68_v33  ;;  %v1834_v33 = vld [vmem:[#allocation7 + $0xf0] sm:$0xff]  }
  0x7d   :  { %903 = vmatpush1.bf16.msra.mxu0 %v1719_v10  ;;  %985 = vmatpush1.bf16.msra.mxu1 %v1722_v11  ;;  %v1811_v10 = vld [vmem:[#allocation7] sm:$0xff]  }
  0x7e   :  { %904 = vmatprep.subr.bf16.mxu0 %v1727_v12  ;;  %986 = vmatprep.subr.bf16.mxu1 %v1730_v13  ;;  %v1812_v11 = vld [vmem:[#allocation7 + $0x80] sm:$0xff]   ;;  %v1813_v12 = vld [vmem:[#allocation7 + $0x48] sm:$0xff]  }
  0x7f   :  { %v1814_v13 = vld [vmem:[#allocation7 + $0xc8] sm:$0xff]  }
  0x81   :  { %905 = vmatpush1.bf16.msra.mxu0 %v1725_v14  ;;  %987 = vmatpush1.bf16.msra.mxu1 %v1728_v15  ;;  %v1815_v14 = vld [vmem:[#allocation7 + $0x8] sm:$0xff]  }
  0x82   :  { %906 = vmatprep.subr.bf16.mxu0 %v1733_v16  ;;  %988 = vmatprep.subr.bf16.mxu1 %v1736_v17  ;;  %v1816_v15 = vld [vmem:[#allocation7 + $0x88] sm:$0xff]   ;;  %v1817_v16 = vld [vmem:[#allocation7 + $0x50] sm:$0xff]  }
  0x83   :  { %v1818_v17 = vld [vmem:[#allocation7 + $0xd0] sm:$0xff]  }
  0x85   :  { %907 = vmatpush1.bf16.msra.mxu0 %v1731_v18  ;;  %989 = vmatpush1.bf16.msra.mxu1 %v1734_v19  ;;  %v1819_v18 = vld [vmem:[#allocation7 + $0x10] sm:$0xff]  }
  0x86   :  { %908 = vmatprep.subr.bf16.mxu0 %v1739_v20  ;;  %990 = vmatprep.subr.bf16.mxu1 %v1742_v21  ;;  %v1820_v19 = vld [vmem:[#allocation7 + $0x90] sm:$0xff]   ;;  %v1821_v20 = vld [vmem:[#allocation7 + $0x58] sm:$0xff]  }
  0x87   :  { %v1822_v21 = vld [vmem:[#allocation7 + $0xd8] sm:$0xff]  }
  0x89   :  { %909 = vmatpush1.bf16.msra.mxu0 %v1737_v22  ;;  %991 = vmatpush1.bf16.msra.mxu1 %v1740_v23  ;;  %v1823_v22 = vld [vmem:[#allocation7 + $0x18] sm:$0xff]  }
  0x8a   :  { %910 = vmatprep.subr.bf16.mxu0 %v1745_v24  ;;  %992 = vmatprep.subr.bf16.mxu1 %v1748_v25  ;;  %v1824_v23 = vld [vmem:[#allocation7 + $0x98] sm:$0xff]   ;;  %v1825_v24 = vld [vmem:[#allocation7 + $0x60] sm:$0xff]  }
  0x8b   :  { %v1826_v25 = vld [vmem:[#allocation7 + $0xe0] sm:$0xff]  }
  0x8d   :  { %911 = vmatpush1.bf16.msra.mxu0 %v1743_v26  ;;  %993 = vmatpush1.bf16.msra.mxu1 %v1746_v27  ;;  %v1827_v26 = vld [vmem:[#allocation7 + $0x20] sm:$0xff]  }
  0x8e   :  { %912 = vmatprep.subr.bf16.mxu0 %v1751_v28  ;;  %994 = vmatprep.subr.bf16.mxu1 %v1754_v29  ;;  %v1828_v27 = vld [vmem:[#allocation7 + $0xa0] sm:$0xff]   ;;  %v1829_v28 = vld [vmem:[#allocation7 + $0x68] sm:$0xff]  }
  0x8f   :  { %v1830_v29 = vld [vmem:[#allocation7 + $0xe8] sm:$0xff]  }
  0x91   :  { %913 = vmatpush1.bf16.msra.mxu0 %v1749_v30  ;;  %995 = vmatpush1.bf16.msra.mxu1 %v1752_v32  ;;  %v1831_v30 = vld [vmem:[#allocation7 + $0x28] sm:$0xff]   ;;  %v1833_v32 = vld [vmem:[#allocation7 + $0x70] sm:$0xff]  }
  0x92   :  { %914 = vmatprep.subr.bf16.mxu0 %v1757_v34  ;;  %996 = vmatprep.subr.bf16.mxu1 %v1760_v35  ;;  %v1835_v34 = vld [vmem:[#allocation7 + $0x30] sm:$0xff]  }
  0x93   :  { %v1836_v35 = vld [vmem:[#allocation7 + $0xb0] sm:$0xff]  }
  0x95   :  { %915 = vmatpush1.bf16.msra.mxu0 %v1755_v36  ;;  %997 = vmatpush1.bf16.msra.mxu1 %v1758_v37  ;;  %v1837_v36 = vld [vmem:[#allocation7 + $0x78] sm:$0xff]  }
  0x96   :  { %916 = vmatprep.subr.bf16.mxu0 %v1763_v38  ;;  %998 = vmatprep.subr.bf16.mxu1 %v1766_v39  ;;  %v1838_v37 = vld [vmem:[#allocation7 + $0xf8] sm:$0xff]  }
  0x97   :  { %v1839_v38 = vld [vmem:[#allocation7 + $0x38] sm:$0xff]  }
  0x98   :  { %v1840_v39 = vld [vmem:[#allocation7 + $0xb8] sm:$0xff]  }
  0x99   :  { %917 = vmatpush1.bf16.msra.mxu0 %v1761_v40  ;;  %999 = vmatpush1.bf16.msra.mxu1 %v1764_v41  ;;  %v199_v40 = vlaneseq }
  0x9a   :  { %918 = vmatprep.subr.bf16.mxu0 %v1769_v42  ;;  %1000 = vmatprep.subr.bf16.mxu1 %v1772_v43 }
  0x9b   :  { %v200_v41 = vshrl.u32 %v199_v40, 7 }
  0x9d   :  { %919 = vmatpush1.bf16.msra.mxu0 %v1767_v44  ;;  %1001 = vmatpush1.bf16.msra.mxu1 %v1770_v45  ;;  %v201_v42 = vsub.s32 0, %v200_v41  ;;  %v209_v43 = vsub.s32 2, %v200_v41  ;;  %v197_v44 = vld [vmem:[%s2029_s2] sm:$0xf]  ;;  %v205_v45 = vsub.s32 1, %v200_v41 }
  0x9e   :  { %920 = vmatprep.subr.bf16.mxu0 %v1775_v46  ;;  %1002 = vmatprep.subr.bf16.mxu1 %v1778_v47  ;;  %v213_v46 = vsub.s32 3, %v200_v41 }
  0x9f   :  { %v202_v47 = vrot.slane %v197_v44, %v201_v42 }
  0xa1   :  { %921 = vmatpush1.bf16.msra.mxu0 %v1773_v48  ;;  %1003 = vmatpush1.bf16.msra.mxu1 %v1776_v49  ;;  %v210_v48 = vrot.slane %v197_v44, %v209_v43  ;;  %v206_v49 = vrot.slane %v197_v44, %v205_v45 }
  0xa2   :  { %922 = vmatprep.subr.bf16.mxu0 %v1781_v50  ;;  %1004 = vmatprep.subr.bf16.mxu1 %v1784_v51  ;;  %v214_v50 = vrot.slane %v197_v44, %v213_v46 }
  0xa5   :  { %923 = vmatpush1.bf16.msra.mxu0 %v1779_v52  ;;  %1005 = vmatpush1.bf16.msra.mxu1 %v1782_v53 }
  0xa6   :  { %924 = vmatprep.subr.bf16.mxu0 %v1787_v54  ;;  %1006 = vmatprep.subr.bf16.mxu1 %v1790_v55 }
  0xa9   :  { %925 = vmatpush1.bf16.msra.mxu0 %v1785_v56  ;;  %1007 = vmatpush1.bf16.msra.mxu1 %v1788_v57 }
  0xaa   :  { %926 = vmatprep.subr.bf16.mxu0 %v1793_v58  ;;  %1008 = vmatprep.subr.bf16.mxu1 %v1796_v59 }
  0xad   :  { %927 = vmatpush1.bf16.msra.mxu0 %v1791_v60  ;;  %1009 = vmatpush1.bf16.msra.mxu1 %v1794_v61 }
  0xae   :  { %928 = vmatprep.subr.bf16.mxu0 %v1799_v62  ;;  %1010 = vmatprep.subr.bf16.mxu1 %v1802_v63 }
  0xb1   :  { %929 = vmatpush1.bf16.msra.mxu0 %v1797_v0  ;;  %1011 = vmatpush1.bf16.msra.mxu1 %v1800_v1 }
  0xb2   :  { %930 = vmatprep.subr.bf16.mxu0 %v1805_v2  ;;  %1012 = vmatprep.subr.bf16.mxu1 %v1808_v3 }
  0xb5   :  { %931 = vmatpush1.bf16.msra.mxu0 %v1803_v4  ;;  %1013 = vmatpush1.bf16.msra.mxu1 %v1806_v5 }
  0xb6   :  { %1553 = vmatprep.subr.bf16.mxu0 %v1809_v7  ;;  %1575 = vmatprep.subr.bf16.mxu1 %v1810_v8 }
  0xb8   :  { %933 = vmatmul.mubr.bf16.vlgmr.msra.gmra.mrb[0].mxu0 %v67_v9  ;;  %1015 = vmatmul.mubr.bf16.vlgmr.msra.gmra.mrb[0].mxu1 %v67_v9  ;;  %v1520_v9 = vld [vmem:[%s2031_s4] ss:$0 sm:$0xff] }
  0xb9   :  { %1554 = vmatpush3.bf16.msra.mxu0 %v1811_v10  ;;  %1576 = vmatpush3.bf16.msra.mxu1 %v1812_v11 }
  0xba   :  { %1555 = vmatprep.subr.bf16.mxu0 %v1813_v12  ;;  %1577 = vmatprep.subr.bf16.mxu1 %v1814_v13 }
  0xbd   :  { %1556 = vmatpush3.bf16.msra.mxu0 %v1815_v14  ;;  %1578 = vmatpush3.bf16.msra.mxu1 %v1816_v15 }
  0xbe   :  { %1557 = vmatprep.subr.bf16.mxu0 %v1817_v16  ;;  %1579 = vmatprep.subr.bf16.mxu1 %v1818_v17 }
  0xc1   :  { %1558 = vmatpush3.bf16.msra.mxu0 %v1819_v18  ;;  %1580 = vmatpush3.bf16.msra.mxu1 %v1820_v19 }
  0xc2   :  { %1559 = vmatprep.subr.bf16.mxu0 %v1821_v20  ;;  %1581 = vmatprep.subr.bf16.mxu1 %v1822_v21 }
  0xc5   :  { %1560 = vmatpush3.bf16.msra.mxu0 %v1823_v22  ;;  %1582 = vmatpush3.bf16.msra.mxu1 %v1824_v23 }
  0xc6   :  { %1561 = vmatprep.subr.bf16.mxu0 %v1825_v24  ;;  %1583 = vmatprep.subr.bf16.mxu1 %v1826_v25 }
  0xc9   :  { %1562 = vmatpush3.bf16.msra.mxu0 %v1827_v26  ;;  %1584 = vmatpush3.bf16.msra.mxu1 %v1828_v27 }
  0xca   :  { %1563 = vmatprep.subr.bf16.mxu0 %v1829_v28  ;;  %1585 = vmatprep.subr.bf16.mxu1 %v1830_v29 }
  0xcd   :  { %1564 = vmatpush3.bf16.msra.mxu0 %v1831_v30  ;;  %1586 = vmatpush3.bf16.msra.mxu1 %v1832_v31 }
  0xce   :  { %1565 = vmatprep.subr.bf16.mxu0 %v1833_v32  ;;  %1587 = vmatprep.subr.bf16.mxu1 %v1834_v33 }
  0xd1   :  { %1566 = vmatpush3.bf16.msra.mxu0 %v1835_v34  ;;  %1588 = vmatpush3.bf16.msra.mxu1 %v1836_v35 }
  0xd2   :  { %1567 = vmatprep.subr.bf16.mxu0 %v1837_v36  ;;  %1589 = vmatprep.subr.bf16.mxu1 %v1838_v37 }
  0xd5   :  { %1568 = vmatpush3.bf16.msra.mxu0 %v1839_v38  ;;  %1590 = vmatpush3.bf16.msra.mxu1 %v1840_v39 }
 0x18b   :  { %v934_v51 = vpop.f32.mrb[0].mxu0  ;;  %v1016_v52 = vpop.f32.mrb[0].mxu1 }
 0x18c   :  { %v1597_v53 = vadd.f32 %v934_v51, %v202_v47  ;;  %v1599_v54 = vadd.f32 %v1016_v52, %v210_v48  ;;  %v936_v55 = vpop.f32.mrb[1].mxu0  ;;  %v1018_v56 = vpop.f32.mrb[1].mxu1 }
 0x18d   :  { %v1598_v57 = vadd.f32 %v936_v55, %v206_v49  ;;  %v1600_v58 = vadd.f32 %v1018_v56, %v214_v50  ;;  %v938_v59 = vpop.f32.mrb[2].mxu0  ;;  %v1020_v60 = vpop.f32.mrb[2].mxu1 }
 0x18e   :  { %v1023_v61 = vmax.f32 %v1597_v53, 0.0  ;;  %v1025_v62 = vmax.f32 %v1599_v54, 0.0  ;;  %v939_v63 = vpop.f32.mrb[3].mxu0  ;;  %v1021_v0 = vpop.f32.mrb[3].mxu1 }
 0x18f   :  { %v1024_v1 = vmax.f32 %v1598_v57, 0.0  ;;  %v1026_v2 = vmax.f32 %v1600_v58, 0.0 }
 0x190   :  { %v1027_v5 = vpack.c.bf16 %v1023_v61, %v1023_v61  ;;  %v1029_v6 = vpack.c.bf16 %v1025_v62, %v1025_v62 }
 0x191   :  { %v1028_v3 = vpack.c.bf16 %v1024_v1, %v1024_v1  ;;  %v1030_v4 = vpack.c.bf16 %v1026_v2, %v1026_v2 }
 0x193   :  { %1326 = vmatprep.mubr.bf16.mxu0 %v1028_v3  ;;  %1366 = vmatprep.mubr.bf16.mxu1 %v1030_v4 }
 0x194   :  { %1327 = vmatmul.mubr.bf16.vlgmr.msra.gmra.mrb[4].mxu0 %v1027_v5  ;;  %1367 = vmatmul.mubr.bf16.vlgmr.msra.gmra.mrb[4].mxu1 %v1029_v6 }
 0x267   :  { %v1569_v7 = vpop.f32.mrb[4].mxu0  ;;  %v1591_v8 = vpop.f32.mrb[4].mxu1 }
 0x268   :  { %v1570_v10 = vpop.f32.mrb[5].mxu0  ;;  %v1592_v11 = vpop.f32.mrb[5].mxu1 }
 0x269   :  { %v1571_v12 = vadd.f32 %v1570_v10, %v1569_v7  ;;  %v1593_v13 = vadd.f32 %v1592_v11, %v1591_v8  ;;  %v1572_v14 = vpop.f32.mrb[6].mxu0  ;;  %v1594_v15 = vpop.f32.mrb[6].mxu1 }
 0x26a   :  { %v1573_v16 = vpop.f32.mrb[7].mxu0  ;;  %v1595_v17 = vpop.f32.mrb[7].mxu1 }
 0x26b   :  { %v1329_v18 = vadd.f32 %v1571_v12, %v1520_v9 }
 0x26d   :  { %v1369_v19 = vadd.f32 %v1593_v13, %v1329_v18 }
 0x26f   :  { %v1374_v20 = vpack.c.bf16 %v1369_v19, %v1369_v19 }
 0x271   :  { %1375 = vst [vmem:[#allocation8] sm:$0xf] %v1374_v20 }
 0x272   :  { %1918 = shalt.err (!%p1915_p0)
}
 0x273   :  { %s1919_s12 = scalar_lea.hbm %s2032_s5, 64 }
 0x274   :  { %p1920_p1 = scmp.ne.s32.totalorder %s2032_s5, %s1919_s12  ;;  %p1923_p2 = scmp.lt.u32.totalorder %s1919_s12, %s2032_s5 }
 0x276   :  { %p1925_p3 = pnand %p1923_p2, %p1920_p1 }
 0x278   :  { %1928 = shalt.err (!%p1925_p3)
}
 0x279   :  { %1385 = dma.vmem_to_hbm [thread:$0]  %s1383_s9, 64, %s2032_s5, [#allocation4]  }
 0x27a   :  { %1933 = dma.done.wait [#allocation4], 64  }
 0x27b   :  { %1934 = vsyncadd [#allocation4], 4294967232 }
 0x27c   :  { %1389 = vsyncpa [#allocation3], 1 }
 0x27d   :  { %1390 = vsyncpa [#allocation6], 1 }
 0x27e   :  { %1391 = vsyncpa [#allocation4], 1 }

</bundles_post_ra>
